<compile_context>
chip_gen: v7x
topology: tpu7x:2x2x1
jax: 0.10.0
libtpu: 0.0.40
codegen_flags: <defaults>
</compile_context>

<pallas_src>
import math
import functools

import jax
import jax.numpy as jnp
from jax import lax
from jax.experimental import pallas as pl
from jax.experimental.pallas import tpu as pltpu

NEG = -1e9  # additive mask value (NaN-safe stand-in for -inf)


# ----------------------------------------------------------------- helpers

def _round_up(v, m):
    return (v + m - 1) // m * m


def _tile(dim, cap, align=1):
    """Return (tile, padded_dim). Single full-extent block when small, cap-sized tiles otherwise."""
    p = _round_up(dim, align)
    if p <= cap:
        return p, p
    return cap, _round_up(dim, cap)


def _add_ln(x, y, g, b, eps):
    """Residual add + LayerNorm over last dim (f32 math)."""
    z = x + y
    mu = jnp.mean(z, axis=-1, keepdims=True)
    var = jnp.mean(jnp.square(z - mu), axis=-1, keepdims=True)
    return (z - mu) * lax.rsqrt(var + eps) * g + b


def _attn_core(q, k, v, kpm_row, n_head, scale, causal):
    """q:[Sq,E], k/v:[Sk,E], kpm_row:[1,Sk] additive bias. Returns [Sq,E]."""
    Sq, E = q.shape
    Sk = k.shape[0]
    Dh = E // n_head

    bias = kpm_row  # [1, Sk]
    if causal:
        qi = lax.broadcasted_iota(jnp.int32, (Sq, Sk), 0)
        ki = lax.broadcasted_iota(jnp.int32, (Sq, Sk), 1)
        bias = bias + jnp.where(ki > qi, NEG, 0.0)

    outs = []
    for h in range(n_head):  # unrolled; n_head is small & static
        sl = slice(h * Dh, (h + 1) * Dh)
        s = lax.dot_general(q[:, sl], k[:, sl], (((1,), (1,)), ((), ())),
                            preferred_element_type=jnp.float32) * scale + bias
        m = jnp.max(s, axis=-1, keepdims=True)
        p = jnp.exp(s - m)
        l = jnp.sum(p, axis=-1, keepdims=True)
        o = jnp.dot(p, v[:, sl], preferred_element_type=jnp.float32)
        outs.append(o * pl.reciprocal(l, approx=True))
    return jnp.concatenate(outs, axis=-1)  # [Sq, E]


# ------------------------------------------------------------------ kernels

def _self_mha_ln_kernel(n_head, scale, causal, eps,
                        x_ref, kpm_ref, w_in_ref, b_in_ref, w_out_ref, b_out_ref,
                        g_ref, beta_ref, o_ref):
    # One batch element: x [1,S,E]; fused QKV proj -> attention -> out proj -> add+LN.
    x = x_ref[0].astype(jnp.float32)                      # [S, E]
    E = x.shape[-1]
    qkv = lax.dot_general(x, w_in_ref[...], (((1,), (1,)), ((), ())),
                          preferred_element_type=jnp.float32) + b_in_ref[...]   # [S, 3E]
    q, k, v = qkv[:, :E], qkv[:, E:2 * E], qkv[:, 2 * E:]
    attn = _attn_core(q, k, v, kpm_ref[0], n_head, scale, causal)               # [S, E]
    out = lax.dot_general(attn, w_out_ref[...], (((1,), (1,)), ((), ())),
                          preferred_element_type=jnp.float32) + b_out_ref[...]
    o_ref[...] = _add_ln(x, out, g_ref[...], beta_ref[...], eps)[None].astype(o_ref.dtype)


def _cross_mha_ln_kernel(n_head, scale, eps,
                         xq_ref, xkv_ref, kpm_ref, w_in_ref, b_in_ref,
                         w_out_ref, b_out_ref, g_ref, beta_ref, o_ref):
    xq = xq_ref[0].astype(jnp.float32)                    # [Sq, E]
    xkv = xkv_ref[0].astype(jnp.float32)                  # [Sk, E]
    E = xq.shape[-1]
    w_in = w_in_ref[...]
    b_in = b_in_ref[...]
    q = lax.dot_general(xq, w_in[:E], (((1,), (1,)), ((), ())),
                        preferred_element_type=jnp.float32) + b_in[:, :E]       # [Sq, E]
    kv = lax.dot_general(xkv, w_in[E:], (((1,), (1,)), ((), ())),
                         preferred_element_type=jnp.float32) + b_in[:, E:]      # [Sk, 2E]
    k, v = kv[:, :E], kv[:, E:]
    attn = _attn_core(q, k, v, kpm_ref[0], n_head, scale, causal=False)
    out = lax.dot_general(attn, w_out_ref[...], (((1,), (1,)), ((), ())),
                          preferred_element_type=jnp.float32) + b_out_ref[...]
    o_ref[...] = _add_ln(xq, out, g_ref[...], beta_ref[...], eps)[None].astype(o_ref.dtype)


def _ffn_ln_kernel(eps, x_ref, w1_ref, b1_ref, w2_ref, b2_ref, g_ref, beta_ref, o_ref):
    # lin1 + ReLU + lin2 + residual + LayerNorm fused; hid intermediate stays in VMEM.
    x = x_ref[...].astype(jnp.float32)                    # [tm, E]
    h = lax.dot_general(x, w1_ref[...], (((1,), (1,)), ((), ())),
                        preferred_element_type=jnp.float32) + b1_ref[...]
    h = jnp.maximum(h, 0.0)
    y = lax.dot_general(h, w2_ref[...], (((1,), (1,)), ((), ())),
                        preferred_element_type=jnp.float32) + b2_ref[...]
    o_ref[...] = _add_ln(x, y, g_ref[...], beta_ref[...], eps).astype(o_ref.dtype)


def _linear_kernel(act, x_ref, w_ref, b_ref, o_ref, acc_ref):
    @pl.when(pl.program_id(2) == 0)
    def _():
        acc_ref[...] = jnp.zeros_like(acc_ref)

    acc_ref[...] += lax.dot_general(x_ref[...], w_ref[...], (((1,), (1,)), ((), ())),
                                    preferred_element_type=jnp.float32)

    @pl.when(pl.program_id(2) == pl.num_programs(2) - 1)
    def _():
        y = acc_ref[...] + b_ref[...]
        if act == "relu":
            y = jnp.maximum(y, 0.0)
        o_ref[...] = y.astype(o_ref.dtype)


# ----------------------------------------------------------------- wrappers

def pallas_self_mha_ln(x, kpm_bias, p, gamma, beta, n_head, causal, eps=1e-5):
    """x:[B,S,E], kpm_bias:[B,1,S] additive f32. Returns LN(x + MHA(x))."""
    B, S, E = x.shape
    scale = 1.0 / math.sqrt(E // n_head)
    kern = functools.partial(_self_mha_ln_kernel, n_head, scale, causal, eps)
    return pl.pallas_call(
        kern,
        grid=(B,),
        in_specs=[
            pl.BlockSpec((1, S, E), lambda b: (b, 0, 0)),
            pl.BlockSpec((1, 1, S), lambda b: (b, 0, 0)),
            pl.BlockSpec((3 * E, E), lambda b: (0, 0)),
            pl.BlockSpec((1, 3 * E), lambda b: (0, 0)),
            pl.BlockSpec((E, E), lambda b: (0, 0)),
            pl.BlockSpec((1, E), lambda b: (0, 0)),
            pl.BlockSpec((1, E), lambda b: (0, 0)),
            pl.BlockSpec((1, E), lambda b: (0, 0)),
        ],
        out_specs=pl.BlockSpec((1, S, E), lambda b: (b, 0, 0)),
        out_shape=jax.ShapeDtypeStruct((B, S, E), x.dtype),
        compiler_params=pltpu.CompilerParams(dimension_semantics=("parallel",)),
    )(x, kpm_bias, p["in_w"], p["in_b"].reshape(1, 3 * E),
      p["out_w"], p["out_b"].reshape(1, E), gamma.reshape(1, E), beta.reshape(1, E))


def pallas_cross_mha_ln(xq, xkv, kpm_bias, p, gamma, beta, n_head, eps=1e-5):
    """xq:[B,Sq,E] (queries/residual), xkv:[B,Sk,E] (memory), kpm_bias:[B,1,Sk]."""
    B, Sq, E = xq.shape
    Sk = xkv.shape[1]
    scale = 1.0 / math.sqrt(E // n_head)
    kern = functools.partial(_cross_mha_ln_kernel, n_head, scale, eps)
    return pl.pallas_call(
        kern,
        grid=(B,),
        in_specs=[
            pl.BlockSpec((1, Sq, E), lambda b: (b, 0, 0)),
            pl.BlockSpec((1, Sk, E), lambda b: (b, 0, 0)),
            pl.BlockSpec((1, 1, Sk), lambda b: (b, 0, 0)),
            pl.BlockSpec((3 * E, E), lambda b: (0, 0)),
            pl.BlockSpec((1, 3 * E), lambda b: (0, 0)),
            pl.BlockSpec((E, E), lambda b: (0, 0)),
            pl.BlockSpec((1, E), lambda b: (0, 0)),
            pl.BlockSpec((1, E), lambda b: (0, 0)),
            pl.BlockSpec((1, E), lambda b: (0, 0)),
        ],
        out_specs=pl.BlockSpec((1, Sq, E), lambda b: (b, 0, 0)),
        out_shape=jax.ShapeDtypeStruct((B, Sq, E), xq.dtype),
        compiler_params=pltpu.CompilerParams(dimension_semantics=("parallel",)),
    )(xq, xkv, kpm_bias, p["in_w"], p["in_b"].reshape(1, 3 * E),
      p["out_w"], p["out_b"].reshape(1, E), gamma.reshape(1, E), beta.reshape(1, E))


def pallas_ffn_ln(x, w1, b1, w2, b2, gamma, beta, eps=1e-5):
    """x:[N,E] -> LN(x + lin2(relu(lin1(x)))). Tiled over rows; weights resident in VMEM."""
    N, E = x.shape
    H = w1.shape[0]
    tm, Np = _tile(N, 256)
    xp = jnp.pad(x, ((0, Np - N), (0, 0))) if Np != N else x
    out = pl.pallas_call(
        functools.partial(_ffn_ln_kernel, eps),
        grid=(Np // tm,),
        in_specs=[
            pl.BlockSpec((tm, E), lambda i: (i, 0)),
            pl.BlockSpec((H, E), lambda i: (0, 0)),
            pl.BlockSpec((1, H), lambda i: (0, 0)),
            pl.BlockSpec((E, H), lambda i: (0, 0)),
            pl.BlockSpec((1, E), lambda i: (0, 0)),
            pl.BlockSpec((1, E), lambda i: (0, 0)),
            pl.BlockSpec((1, E), lambda i: (0, 0)),
        ],
        out_specs=pl.BlockSpec((tm, E), lambda i: (i, 0)),
        out_shape=jax.ShapeDtypeStruct((Np, E), x.dtype),
        compiler_params=pltpu.CompilerParams(dimension_semantics=("parallel",)),
    )(xp, w1, b1.reshape(1, H), w2, b2.reshape(1, E),
      gamma.reshape(1, E), beta.reshape(1, E))
    return out[:N] if Np != N else out


def pallas_linear(x, w, b, act=None):
    """y = x @ w.T + b with w in PyTorch [out,in] layout (no transpose at call site).

    Tiled over (rows, out, K) with an f32 VMEM accumulator; output axis padded to a
    multiple of 128 so stores are lane-dense, then sliced back."""
    N, K = x.shape
    M = w.shape[0]
    tm, Np = _tile(N, 256)
    tn, Mp = _tile(M, 512, align=128)     # lane-dense output
    tk, Kp = _tile(K, 512)
    if (Np, Kp) != (N, K):
        x = jnp.pad(x, ((0, Np - N), (0, Kp - K)))
    if (Mp, Kp) != (M, K):
        w = jnp.pad(w, ((0, Mp - M), (0, Kp - K)))
    bp = (jnp.pad(b, (0, Mp - M)) if Mp != M else b).reshape(1, Mp)

    out = pl.pallas_call(
        functools.partial(_linear_kernel, act),
        grid=(Np // tm, Mp // tn, Kp // tk),
        in_specs=[
            pl.BlockSpec((tm, tk), lambda i, j, k: (i, k)),
            pl.BlockSpec((tn, tk), lambda i, j, k: (j, k)),
            pl.BlockSpec((1, tn), lambda i, j, k: (0, j)),
        ],
        out_specs=pl.BlockSpec((tm, tn), lambda i, j, k: (i, j)),
        out_shape=jax.ShapeDtypeStruct((Np, Mp), x.dtype),
        scratch_shapes=[pltpu.VMEM((tm, tn), jnp.float32)],
        compiler_params=pltpu.CompilerParams(
            dimension_semantics=("parallel", "parallel", "arbitrary")),
    )(x, w, bp)
    return out[:N, :M] if (Np, Mp) != (N, M) else out


# --------------------------------------------------------------- model glue

def encoder_layer(x, p, n_head, src_kpm_bias):
    B, S, E = x.shape
    x1 = pallas_self_mha_ln(x, src_kpm_bias, p["self_attn"], p["ln1_g"], p["ln1_b"],
                            n_head, causal=False)
    x2 = pallas_ffn_ln(x1.reshape(B * S, E), p["lin1_w"], p["lin1_b"],
                       p["lin2_w"], p["lin2_b"], p["ln2_g"], p["ln2_b"])
    return x2.reshape(B, S, E)


def decoder_layer(y, memory, p, n_head, tgt_kpm_bias, mem_kpm_bias):
    B, S, E = y.shape
    y1 = pallas_self_mha_ln(y, tgt_kpm_bias, p["self_attn"], p["ln1_g"], p["ln1_b"],
                            n_head, causal=True)
    y2 = pallas_cross_mha_ln(y1, memory, mem_kpm_bias, p["cross_attn"],
                             p["ln2_g"], p["ln2_b"], n_head)
    y3 = pallas_ffn_ln(y2.reshape(B * S, E), p["lin1_w"], p["lin1_b"],
                       p["lin2_w"], p["lin2_b"], p["ln3_g"], p["ln3_b"])
    return y3.reshape(B, S, E)


def positional_encoding(max_len, d_model):
    position = jnp.arange(max_len, dtype=jnp.float32)[:, None]
    div_term = jnp.exp(jnp.arange(0, d_model, 2, dtype=jnp.float32)
                       * (-math.log(10000.0) / d_model))
    pe = jnp.zeros((max_len, d_model), jnp.float32)
    pe = pe.at[:, 0::2].set(jnp.sin(position * div_term))
    pe = pe.at[:, 1::2].set(jnp.cos(position * div_term))
    return pe  # [max_len, d_model]


def transformer_forward(params, src, tgt, n_head, embed_dim, pad_idx=0):
    # src, tgt: int32 [S, B] token ids (seq-first interface, like PyTorch).
    # Internally everything is batch-first [B, S, E]; output is [S_tgt, B, vocab].
    S_src, B = src.shape
    S_tgt = tgt.shape[0]
    scale = math.sqrt(embed_dim)
    pe = params["pe"]

    # Tiny additive padding-bias rows; the full [B*H, Sq, Sk] bias is built in-kernel.
    src_bias = jnp.where((src == pad_idx).T, NEG, 0.0).astype(jnp.float32)[:, None, :]  # [B,1,Ss]
    tgt_bias = jnp.where((tgt == pad_idx).T, NEG, 0.0).astype(jnp.float32)[:, None, :]  # [B,1,St]

    # TODO(synk): dropout layers are identity here (eval-mode forward); embedding gather
    # and positional-encoding add are plain XLA glue.
    x = params["embed_src"][src.T] * scale + pe[:S_src][None]   # [B, S_src, E]
    for lp in params["enc_layers"]:
        x = encoder_layer(x, lp, n_head, src_bias)
    memory = x

    y = params["embed_tgt"][tgt.T] * scale + pe[:S_tgt][None]   # [B, S_tgt, E]
    for lp in params["dec_layers"]:
        y = decoder_layer(y, memory, lp, n_head, tgt_bias, src_bias)

    logits = pallas_linear(y.reshape(B * S_tgt, embed_dim),
                           params["fc_out_w"], params["fc_out_b"])
    return logits.reshape(B, S_tgt, -1).transpose(1, 0, 2)      # [S_tgt, B, vocab]


# ------------------------------------------------------------ param init

def init_params(key, vocab_size, embed_dim, n_head, hid_dim, n_layer, max_len=150):
    keys = iter(jax.random.split(key, 256))

    def dense(out_dim, in_dim):
        return 0.02 * jax.random.normal(next(keys), (out_dim, in_dim), jnp.float32)

    def zeros(d):
        return jnp.zeros((d,), jnp.float32)

    def attn_params():
        return dict(in_w=dense(3 * embed_dim, embed_dim), in_b=zeros(3 * embed_dim),
                    out_w=dense(embed_dim, embed_dim), out_b=zeros(embed_dim))

    def enc_layer():
        return dict(self_attn=attn_params(),
                    lin1_w=dense(hid_dim, embed_dim), lin1_b=zeros(hid_dim),
                    lin2_w=dense(embed_dim, hid_dim), lin2_b=zeros(embed_dim),
                    ln1_g=jnp.ones((embed_dim,), jnp.float32), ln1_b=zeros(embed_dim),
                    ln2_g=jnp.ones((embed_dim,), jnp.float32), ln2_b=zeros(embed_dim))

    def dec_layer():
        return dict(self_attn=attn_params(), cross_attn=attn_params(),
                    lin1_w=dense(hid_dim, embed_dim), lin1_b=zeros(hid_dim),
                    lin2_w=dense(embed_dim, hid_dim), lin2_b=zeros(embed_dim),
                    ln1_g=jnp.ones((embed_dim,), jnp.float32), ln1_b=zeros(embed_dim),
                    ln2_g=jnp.ones((embed_dim,), jnp.float32), ln2_b=zeros(embed_dim),
                    ln3_g=jnp.ones((embed_dim,), jnp.float32), ln3_b=zeros(embed_dim))

    return dict(
        embed_src=0.02 * jax.random.normal(next(keys), (vocab_size, embed_dim), jnp.float32),
        embed_tgt=0.02 * jax.random.normal(next(keys), (vocab_size, embed_dim), jnp.float32),
        fc_out_w=dense(vocab_size, embed_dim), fc_out_b=zeros(vocab_size),
        enc_layers=[enc_layer() for _ in range(n_layer)],
        dec_layers=[dec_layer() for _ in range(n_layer)],
        pe=positional_encoding(max_len, embed_dim),
    )


# ------------------------------------------------------------------- main

if __name__ == "__main__":
    vocab_size, embed_dim, n_head, hid_dim, n_layer = 50, 32, 4, 64, 2
    S, B = 8, 2

    key = jax.random.PRNGKey(0)
    kp, ks, kt = jax.random.split(key, 3)
    params = init_params(kp, vocab_size, embed_dim, n_head, hid_dim, n_layer)

    # token ids [S, B]; introduce some padding (pad_idx=0) at sequence tails
    src = jax.random.randint(ks, (S, B), 1, vocab_size, dtype=jnp.int32)
    tgt = jax.random.randint(kt, (S, B), 1, vocab_size, dtype=jnp.int32)
    src = src.at[6:, 1].set(0)
    tgt = tgt.at[7:, 0].set(0)

    fwd = jax.jit(functools.partial(transformer_forward, n_head=n_head,
                                    embed_dim=embed_dim, pad_idx=0))
    out = jax.block_until_ready(fwd(params, src, tgt))

    assert out.shape == (S, B, vocab_size), out.shape
    assert bool(jnp.all(jnp.isfinite(out)))
    print("KERNEL_OK")
</pallas_src>

<mosaic_0001>
module attributes {stable_mosaic.version = 11 : i64} {
  func.func @_ffn_ln_kernel(%arg0: i32, %arg1: memref<16x32xf32, #tpu.memory_space<vmem>>, %arg2: memref<64x32xf32, #tpu.memory_space<vmem>>, %arg3: memref<1x64xf32, #tpu.memory_space<vmem>>, %arg4: memref<32x64xf32, #tpu.memory_space<vmem>>, %arg5: memref<1x32xf32, #tpu.memory_space<vmem>>, %arg6: memref<1x32xf32, #tpu.memory_space<vmem>>, %arg7: memref<1x32xf32, #tpu.memory_space<vmem>>, %arg8: memref<16x32xf32, #tpu.memory_space<vmem>>) attributes {dimension_semantics = [#tpu.dimension_semantics<parallel>], iteration_bounds = array<i64: 1>, scalar_prefetch = 0 : i64, scratch_operands = 0 : i64, tpu.core_type = #tpu.core_type<tc>, window_params = [{transform_indices = @transform_0, window_bounds = array<i64: 16, 32>}, {pipeline_mode = #tpu.pipeline_mode<synchronous>, transform_indices = @transform_1, window_bounds = array<i64: 64, 32>}, {pipeline_mode = #tpu.pipeline_mode<synchronous>, transform_indices = @transform_2, window_bounds = array<i64: 1, 64>}, {pipeline_mode = #tpu.pipeline_mode<synchronous>, transform_indices = @transform_3, window_bounds = array<i64: 32, 64>}, {pipeline_mode = #tpu.pipeline_mode<synchronous>, transform_indices = @transform_4, window_bounds = array<i64: 1, 32>}, {pipeline_mode = #tpu.pipeline_mode<synchronous>, transform_indices = @transform_5, window_bounds = array<i64: 1, 32>}, {pipeline_mode = #tpu.pipeline_mode<synchronous>, transform_indices = @transform_6, window_bounds = array<i64: 1, 32>}, {transform_indices = @transform_7, window_bounds = array<i64: 16, 32>}]} {
    %c0 = arith.constant 0 : index
    %c0_0 = arith.constant 0 : index
    %0 = vector.load %arg1[%c0, %c0_0] : memref<16x32xf32, #tpu.memory_space<vmem>>, vector<16x32xf32>
    %c0_1 = arith.constant 0 : index
    %c0_2 = arith.constant 0 : index
    %1 = vector.load %arg2[%c0_1, %c0_2] : memref<64x32xf32, #tpu.memory_space<vmem>>, vector<64x32xf32>
    %cst = arith.constant dense<0.000000e+00> : vector<16x64xf32>
    %2 = tpu.matmul %0, %1, %cst {dimension_numbers = #tpu.dot_dimension_numbers<[1], [1], [0], [0], [0, 0, 1, 0], [], []>} : vector<16x32xf32>, vector<64x32xf32>, vector<16x64xf32> -> vector<16x64xf32>
    %c0_3 = arith.constant 0 : index
    %c0_4 = arith.constant 0 : index
    %3 = vector.load %arg3[%c0_3, %c0_4] : memref<1x64xf32, #tpu.memory_space<vmem>>, vector<1x64xf32>
    %4 = vector.broadcast %3 : vector<1x64xf32> to vector<16x64xf32>
    %5 = arith.addf %2, %4 : vector<16x64xf32>
    %cst_5 = arith.constant 0.000000e+00 : f32
    %6 = vector.broadcast %cst_5 : f32 to vector<16x64xf32>
    %7 = arith.maximumf %5, %6 : vector<16x64xf32>
    %c0_6 = arith.constant 0 : index
    %c0_7 = arith.constant 0 : index
    %8 = vector.load %arg4[%c0_6, %c0_7] : memref<32x64xf32, #tpu.memory_space<vmem>>, vector<32x64xf32>
    %cst_8 = arith.constant dense<0.000000e+00> : vector<16x32xf32>
    %9 = tpu.matmul %7, %8, %cst_8 {dimension_numbers = #tpu.dot_dimension_numbers<[1], [1], [0], [0], [0, 0, 1, 0], [], []>} : vector<16x64xf32>, vector<32x64xf32>, vector<16x32xf32> -> vector<16x32xf32>
    %c0_9 = arith.constant 0 : index
    %c0_10 = arith.constant 0 : index
    %10 = vector.load %arg5[%c0_9, %c0_10] : memref<1x32xf32, #tpu.memory_space<vmem>>, vector<1x32xf32>
    %11 = vector.broadcast %10 : vector<1x32xf32> to vector<16x32xf32>
    %12 = arith.addf %9, %11 : vector<16x32xf32>
    %c0_11 = arith.constant 0 : index
    %c0_12 = arith.constant 0 : index
    %13 = vector.load %arg6[%c0_11, %c0_12] : memref<1x32xf32, #tpu.memory_space<vmem>>, vector<1x32xf32>
    %c0_13 = arith.constant 0 : index
    %c0_14 = arith.constant 0 : index
    %14 = vector.load %arg7[%c0_13, %c0_14] : memref<1x32xf32, #tpu.memory_space<vmem>>, vector<1x32xf32>
    %15 = arith.addf %0, %12 : vector<16x32xf32>
    %cst_15 = arith.constant dense<0.000000e+00> : vector<16xf32>
    %16 = vector.multi_reduction <add>, %15, %cst_15 [1] : vector<16x32xf32> to vector<16xf32>
    %17 = vector.shape_cast %16 : vector<16xf32> to vector<16x1xf32>
    %cst_16 = arith.constant 3.200000e+01 : f32
    %18 = vector.broadcast %cst_16 : f32 to vector<16x1xf32>
    %19 = arith.divf %17, %18 : vector<16x1xf32>
    %20 = vector.broadcast %19 : vector<16x1xf32> to vector<16x32xf32>
    %21 = arith.subf %15, %20 : vector<16x32xf32>
    %22 = arith.mulf %21, %21 : vector<16x32xf32>
    %cst_17 = arith.constant dense<0.000000e+00> : vector<16xf32>
    %23 = vector.multi_reduction <add>, %22, %cst_17 [1] : vector<16x32xf32> to vector<16xf32>
    %24 = vector.shape_cast %23 : vector<16xf32> to vector<16x1xf32>
    %cst_18 = arith.constant 3.200000e+01 : f32
    %25 = vector.broadcast %cst_18 : f32 to vector<16x1xf32>
    %26 = arith.divf %24, %25 : vector<16x1xf32>
    %27 = vector.broadcast %19 : vector<16x1xf32> to vector<16x32xf32>
    %28 = arith.subf %15, %27 : vector<16x32xf32>
    %cst_19 = arith.constant 9.99999974E-6 : f32
    %29 = vector.broadcast %cst_19 : f32 to vector<16x1xf32>
    %30 = arith.addf %26, %29 : vector<16x1xf32>
    %31 = math.rsqrt %30 : vector<16x1xf32>
    %32 = vector.broadcast %31 : vector<16x1xf32> to vector<16x32xf32>
    %33 = arith.mulf %28, %32 : vector<16x32xf32>
    %34 = vector.broadcast %13 : vector<1x32xf32> to vector<16x32xf32>
    %35 = arith.mulf %33, %34 : vector<16x32xf32>
    %36 = vector.broadcast %14 : vector<1x32xf32> to vector<16x32xf32>
    %37 = arith.addf %35, %36 : vector<16x32xf32>
    %c0_20 = arith.constant 0 : index
    %c0_21 = arith.constant 0 : index
    %38 = vector.load %arg8[%c0_20, %c0_21] : memref<16x32xf32, #tpu.memory_space<vmem>>, vector<16x32xf32>
    tpu.vector_store %arg8[%c0_20, %c0_21], %37 {strides = array<i32>} : memref<16x32xf32, #tpu.memory_space<vmem>>, vector<16x32xf32>,
    return
  }
  func.func @transform_0(%arg0: i32) -> (i32, i32) {
    %c0_i32 = arith.constant 0 : i32
    %c0_i32_0 = arith.constant 0 : i32
    return %arg0, %c0_i32 : i32, i32
  }
  func.func @transform_1(%arg0: i32) -> (i32, i32) {
    %c0_i32 = arith.constant 0 : i32
    %c0_i32_0 = arith.constant 0 : i32
    %c0_i32_1 = arith.constant 0 : i32
    return %c0_i32, %c0_i32_0 : i32, i32
  }
  func.func @transform_2(%arg0: i32) -> (i32, i32) {
    %c0_i32 = arith.constant 0 : i32
    %c0_i32_0 = arith.constant 0 : i32
    %c0_i32_1 = arith.constant 0 : i32
    return %c0_i32, %c0_i32_0 : i32, i32
  }
  func.func @transform_3(%arg0: i32) -> (i32, i32) {
    %c0_i32 = arith.constant 0 : i32
    %c0_i32_0 = arith.constant 0 : i32
    %c0_i32_1 = arith.constant 0 : i32
    return %c0_i32, %c0_i32_0 : i32, i32
  }
  func.func @transform_4(%arg0: i32) -> (i32, i32) {
    %c0_i32 = arith.constant 0 : i32
    %c0_i32_0 = arith.constant 0 : i32
    %c0_i32_1 = arith.constant 0 : i32
    return %c0_i32, %c0_i32_0 : i32, i32
  }
  func.func @transform_5(%arg0: i32) -> (i32, i32) {
    %c0_i32 = arith.constant 0 : i32
    %c0_i32_0 = arith.constant 0 : i32
    %c0_i32_1 = arith.constant 0 : i32
    return %c0_i32, %c0_i32_0 : i32, i32
  }
  func.func @transform_6(%arg0: i32) -> (i32, i32) {
    %c0_i32 = arith.constant 0 : i32
    %c0_i32_0 = arith.constant 0 : i32
    %c0_i32_1 = arith.constant 0 : i32
    return %c0_i32, %c0_i32_0 : i32, i32
  }
  func.func @transform_7(%arg0: i32) -> (i32, i32) {
    %c0_i32 = arith.constant 0 : i32
    %c0_i32_0 = arith.constant 0 : i32
    return %arg0, %c0_i32 : i32, i32
  }
}

module attributes {stable_mosaic.version = 11 : i64} {
  func.func @_self_mha_ln_kernel(%arg0: i32, %arg1: memref<1x8x32xf32, #tpu.memory_space<vmem>>, %arg2: memref<1x1x8xf32, #tpu.memory_space<vmem>>, %arg3: memref<96x32xf32, #tpu.memory_space<vmem>>, %arg4: memref<1x96xf32, #tpu.memory_space<vmem>>, %arg5: memref<32x32xf32, #tpu.memory_space<vmem>>, %arg6: memref<1x32xf32, #tpu.memory_space<vmem>>, %arg7: memref<1x32xf32, #tpu.memory_space<vmem>>, %arg8: memref<1x32xf32, #tpu.memory_space<vmem>>, %arg9: memref<1x8x32xf32, #tpu.memory_space<vmem>>) attributes {dimension_semantics = [#tpu.dimension_semantics<parallel>], iteration_bounds = array<i64: 2>, scalar_prefetch = 0 : i64, scratch_operands = 0 : i64, tpu.core_type = #tpu.core_type<tc>, window_params = [{transform_indices = @transform_0, window_bounds = array<i64: 1, 8, 32>}, {transform_indices = @transform_1, window_bounds = array<i64: 1, 1, 8>}, {pipeline_mode = #tpu.pipeline_mode<synchronous>, transform_indices = @transform_2, window_bounds = array<i64: 96, 32>}, {pipeline_mode = #tpu.pipeline_mode<synchronous>, transform_indices = @transform_3, window_bounds = array<i64: 1, 96>}, {pipeline_mode = #tpu.pipeline_mode<synchronous>, transform_indices = @transform_4, window_bounds = array<i64: 32, 32>}, {pipeline_mode = #tpu.pipeline_mode<synchronous>, transform_indices = @transform_5, window_bounds = array<i64: 1, 32>}, {pipeline_mode = #tpu.pipeline_mode<synchronous>, transform_indices = @transform_6, window_bounds = array<i64: 1, 32>}, {pipeline_mode = #tpu.pipeline_mode<synchronous>, transform_indices = @transform_7, window_bounds = array<i64: 1, 32>}, {transform_indices = @transform_8, window_bounds = array<i64: 1, 8, 32>}]} {
    %c0 = arith.constant 0 : index
    %c0_0 = arith.constant 0 : index
    %c0_1 = arith.constant 0 : index
    %0 = vector.load %arg1[%c0, %c0_0, %c0_1] : memref<1x8x32xf32, #tpu.memory_space<vmem>>, vector<1x8x32xf32>
    %1 = vector.shape_cast %0 : vector<1x8x32xf32> to vector<8x32xf32>
    %c0_2 = arith.constant 0 : index
    %c0_3 = arith.constant 0 : index
    %2 = vector.load %arg3[%c0_2, %c0_3] : memref<96x32xf32, #tpu.memory_space<vmem>>, vector<96x32xf32>
    %cst = arith.constant dense<0.000000e+00> : vector<8x96xf32>
    %3 = tpu.matmul %1, %2, %cst {dimension_numbers = #tpu.dot_dimension_numbers<[1], [1], [0], [0], [0, 0, 1, 0], [], []>} : vector<8x32xf32>, vector<96x32xf32>, vector<8x96xf32> -> vector<8x96xf32>
    %c0_4 = arith.constant 0 : index
    %c0_5 = arith.constant 0 : index
    %4 = vector.load %arg4[%c0_4, %c0_5] : memref<1x96xf32, #tpu.memory_space<vmem>>, vector<1x96xf32>
    %5 = vector.broadcast %4 : vector<1x96xf32> to vector<8x96xf32>
    %6 = arith.addf %3, %5 : vector<8x96xf32>
    %7 = vector.extract_strided_slice %6 {offsets = [0, 0], sizes = [8, 32], strides = [1, 1]} : vector<8x96xf32> to vector<8x32xf32>
    %8 = vector.extract_strided_slice %6 {offsets = [0, 32], sizes = [8, 32], strides = [1, 1]} : vector<8x96xf32> to vector<8x32xf32>
    %9 = vector.extract_strided_slice %6 {offsets = [0, 64], sizes = [8, 32], strides = [1, 1]} : vector<8x96xf32> to vector<8x32xf32>
    %c0_6 = arith.constant 0 : index
    %c0_7 = arith.constant 0 : index
    %c0_8 = arith.constant 0 : index
    %10 = vector.load %arg2[%c0_6, %c0_7, %c0_8] : memref<1x1x8xf32, #tpu.memory_space<vmem>>, vector<1x1x8xf32>
    %11 = vector.shape_cast %10 : vector<1x1x8xf32> to vector<1x8xf32>
    %12 = vector.extract_strided_slice %7 {offsets = [0, 0], sizes = [8, 8], strides = [1, 1]} : vector<8x32xf32> to vector<8x8xf32>
    %13 = vector.extract_strided_slice %8 {offsets = [0, 0], sizes = [8, 8], strides = [1, 1]} : vector<8x32xf32> to vector<8x8xf32>
    %cst_9 = arith.constant dense<0.000000e+00> : vector<8x8xf32>
    %14 = tpu.matmul %12, %13, %cst_9 {dimension_numbers = #tpu.dot_dimension_numbers<[1], [1], [0], [0], [0, 0, 1, 0], [], []>} : vector<8x8xf32>, vector<8x8xf32>, vector<8x8xf32> -> vector<8x8xf32>
    %cst_10 = arith.constant 0.353553385 : f32
    %15 = vector.broadcast %cst_10 : f32 to vector<8x8xf32>
    %16 = arith.mulf %14, %15 : vector<8x8xf32>
    %17 = vector.broadcast %11 : vector<1x8xf32> to vector<8x8xf32>
    %18 = arith.addf %16, %17 : vector<8x8xf32>
    %cst_11 = arith.constant dense<0xFF800000> : vector<8xf32>
    %19 = vector.multi_reduction <maximumf>, %18, %cst_11 [1] : vector<8x8xf32> to vector<8xf32>
    %20 = vector.shape_cast %19 : vector<8xf32> to vector<8x1xf32>
    %21 = vector.broadcast %20 : vector<8x1xf32> to vector<8x8xf32>
    %22 = arith.subf %18, %21 : vector<8x8xf32>
    %23 = math.exp %22 : vector<8x8xf32>
    %cst_12 = arith.constant dense<0.000000e+00> : vector<8xf32>
    %24 = vector.multi_reduction <add>, %23, %cst_12 [1] : vector<8x8xf32> to vector<8xf32>
    %25 = vector.shape_cast %24 : vector<8xf32> to vector<8x1xf32>
    %26 = vector.extract_strided_slice %9 {offsets = [0, 0], sizes = [8, 8], strides = [1, 1]} : vector<8x32xf32> to vector<8x8xf32>
    %cst_13 = arith.constant dense<0.000000e+00> : vector<8x8xf32>
    %27 = tpu.matmul %23, %26, %cst_13 {dimension_numbers = #tpu.dot_dimension_numbers<[1], [0], [0], [1], [0, 0, 1, 1], [], []>} : vector<8x8xf32>, vector<8x8xf32>, vector<8x8xf32> -> vector<8x8xf32>
    %28 = tpu.reciprocal %25 {approx = true} : vector<8x1xf32> -> vector<8x1xf32>
    %29 = vector.broadcast %28 : vector<8x1xf32> to vector<8x8xf32>
    %30 = arith.mulf %27, %29 : vector<8x8xf32>
    %31 = vector.extract_strided_slice %7 {offsets = [0, 8], sizes = [8, 8], strides = [1, 1]} : vector<8x32xf32> to vector<8x8xf32>
    %32 = vector.extract_strided_slice %8 {offsets = [0, 8], sizes = [8, 8], strides = [1, 1]} : vector<8x32xf32> to vector<8x8xf32>
    %cst_14 = arith.constant dense<0.000000e+00> : vector<8x8xf32>
    %33 = tpu.matmul %31, %32, %cst_14 {dimension_numbers = #tpu.dot_dimension_numbers<[1], [1], [0], [0], [0, 0, 1, 0], [], []>} : vector<8x8xf32>, vector<8x8xf32>, vector<8x8xf32> -> vector<8x8xf32>
    %cst_15 = arith.constant 0.353553385 : f32
    %34 = vector.broadcast %cst_15 : f32 to vector<8x8xf32>
    %35 = arith.mulf %33, %34 : vector<8x8xf32>
    %36 = vector.broadcast %11 : vector<1x8xf32> to vector<8x8xf32>
    %37 = arith.addf %35, %36 : vector<8x8xf32>
    %cst_16 = arith.constant dense<0xFF800000> : vector<8xf32>
    %38 = vector.multi_reduction <maximumf>, %37, %cst_16 [1] : vector<8x8xf32> to vector<8xf32>
    %39 = vector.shape_cast %38 : vector<8xf32> to vector<8x1xf32>
    %40 = vector.broadcast %39 : vector<8x1xf32> to vector<8x8xf32>
    %41 = arith.subf %37, %40 : vector<8x8xf32>
    %42 = math.exp %41 : vector<8x8xf32>
    %cst_17 = arith.constant dense<0.000000e+00> : vector<8xf32>
    %43 = vector.multi_reduction <add>, %42, %cst_17 [1] : vector<8x8xf32> to vector<8xf32>
    %44 = vector.shape_cast %43 : vector<8xf32> to vector<8x1xf32>
    %45 = vector.extract_strided_slice %9 {offsets = [0, 8], sizes = [8, 8], strides = [1, 1]} : vector<8x32xf32> to vector<8x8xf32>
    %cst_18 = arith.constant dense<0.000000e+00> : vector<8x8xf32>
    %46 = tpu.matmul %42, %45, %cst_18 {dimension_numbers = #tpu.dot_dimension_numbers<[1], [0], [0], [1], [0, 0, 1, 1], [], []>} : vector<8x8xf32>, vector<8x8xf32>, vector<8x8xf32> -> vector<8x8xf32>
    %47 = tpu.reciprocal %44 {approx = true} : vector<8x1xf32> -> vector<8x1xf32>
    %48 = vector.broadcast %47 : vector<8x1xf32> to vector<8x8xf32>
    %49 = arith.mulf %46, %48 : vector<8x8xf32>
    %50 = vector.extract_strided_slice %7 {offsets = [0, 16], sizes = [8, 8], strides = [1, 1]} : vector<8x32xf32> to vector<8x8xf32>
    %51 = vector.extract_strided_slice %8 {offsets = [0, 16], sizes = [8, 8], strides = [1, 1]} : vector<8x32xf32> to vector<8x8xf32>
    %cst_19 = arith.constant dense<0.000000e+00> : vector<8x8xf32>
    %52 = tpu.matmul %50, %51, %cst_19 {dimension_numbers = #tpu.dot_dimension_numbers<[1], [1], [0], [0], [0, 0, 1, 0], [], []>} : vector<8x8xf32>, vector<8x8xf32>, vector<8x8xf32> -> vector<8x8xf32>
    %cst_20 = arith.constant 0.353553385 : f32
    %53 = vector.broadcast %cst_20 : f32 to vector<8x8xf32>
    %54 = arith.mulf %52, %53 : vector<8x8xf32>
    %55 = vector.broadcast %11 : vector<1x8xf32> to vector<8x8xf32>
    %56 = arith.addf %54, %55 : vector<8x8xf32>
    %cst_21 = arith.constant dense<0xFF800000> : vector<8xf32>
    %57 = vector.multi_reduction <maximumf>, %56, %cst_21 [1] : vector<8x8xf32> to vector<8xf32>
    %58 = vector.shape_cast %57 : vector<8xf32> to vector<8x1xf32>
    %59 = vector.broadcast %58 : vector<8x1xf32> to vector<8x8xf32>
    %60 = arith.subf %56, %59 : vector<8x8xf32>
    %61 = math.exp %60 : vector<8x8xf32>
    %cst_22 = arith.constant dense<0.000000e+00> : vector<8xf32>
    %62 = vector.multi_reduction <add>, %61, %cst_22 [1] : vector<8x8xf32> to vector<8xf32>
    %63 = vector.shape_cast %62 : vector<8xf32> to vector<8x1xf32>
    %64 = vector.extract_strided_slice %9 {offsets = [0, 16], sizes = [8, 8], strides = [1, 1]} : vector<8x32xf32> to vector<8x8xf32>
    %cst_23 = arith.constant dense<0.000000e+00> : vector<8x8xf32>
    %65 = tpu.matmul %61, %64, %cst_23 {dimension_numbers = #tpu.dot_dimension_numbers<[1], [0], [0], [1], [0, 0, 1, 1], [], []>} : vector<8x8xf32>, vector<8x8xf32>, vector<8x8xf32> -> vector<8x8xf32>
    %66 = tpu.reciprocal %63 {approx = true} : vector<8x1xf32> -> vector<8x1xf32>
    %67 = vector.broadcast %66 : vector<8x1xf32> to vector<8x8xf32>
    %68 = arith.mulf %65, %67 : vector<8x8xf32>
    %69 = vector.extract_strided_slice %7 {offsets = [0, 24], sizes = [8, 8], strides = [1, 1]} : vector<8x32xf32> to vector<8x8xf32>
    %70 = vector.extract_strided_slice %8 {offsets = [0, 24], sizes = [8, 8], strides = [1, 1]} : vector<8x32xf32> to vector<8x8xf32>
    %cst_24 = arith.constant dense<0.000000e+00> : vector<8x8xf32>
    %71 = tpu.matmul %69, %70, %cst_24 {dimension_numbers = #tpu.dot_dimension_numbers<[1], [1], [0], [0], [0, 0, 1, 0], [], []>} : vector<8x8xf32>, vector<8x8xf32>, vector<8x8xf32> -> vector<8x8xf32>
    %cst_25 = arith.constant 0.353553385 : f32
    %72 = vector.broadcast %cst_25 : f32 to vector<8x8xf32>
    %73 = arith.mulf %71, %72 : vector<8x8xf32>
    %74 = vector.broadcast %11 : vector<1x8xf32> to vector<8x8xf32>
    %75 = arith.addf %73, %74 : vector<8x8xf32>
    %cst_26 = arith.constant dense<0xFF800000> : vector<8xf32>
    %76 = vector.multi_reduction <maximumf>, %75, %cst_26 [1] : vector<8x8xf32> to vector<8xf32>
    %77 = vector.shape_cast %76 : vector<8xf32> to vector<8x1xf32>
    %78 = vector.broadcast %77 : vector<8x1xf32> to vector<8x8xf32>
    %79 = arith.subf %75, %78 : vector<8x8xf32>
    %80 = math.exp %79 : vector<8x8xf32>
    %cst_27 = arith.constant dense<0.000000e+00> : vector<8xf32>
    %81 = vector.multi_reduction <add>, %80, %cst_27 [1] : vector<8x8xf32> to vector<8xf32>
    %82 = vector.shape_cast %81 : vector<8xf32> to vector<8x1xf32>
    %83 = vector.extract_strided_slice %9 {offsets = [0, 24], sizes = [8, 8], strides = [1, 1]} : vector<8x32xf32> to vector<8x8xf32>
    %cst_28 = arith.constant dense<0.000000e+00> : vector<8x8xf32>
    %84 = tpu.matmul %80, %83, %cst_28 {dimension_numbers = #tpu.dot_dimension_numbers<[1], [0], [0], [1], [0, 0, 1, 1], [], []>} : vector<8x8xf32>, vector<8x8xf32>, vector<8x8xf32> -> vector<8x8xf32>
    %85 = tpu.reciprocal %82 {approx = true} : vector<8x1xf32> -> vector<8x1xf32>
    %86 = vector.broadcast %85 : vector<8x1xf32> to vector<8x8xf32>
    %87 = arith.mulf %84, %86 : vector<8x8xf32>
    %88 = tpu.concatenate %30, %49, %68, %87 in 1 : vector<8x8xf32>, vector<8x8xf32>, vector<8x8xf32>, vector<8x8xf32> -> vector<8x32xf32>
    %c0_29 = arith.constant 0 : index
    %c0_30 = arith.constant 0 : index
    %89 = vector.load %arg5[%c0_29, %c0_30] : memref<32x32xf32, #tpu.memory_space<vmem>>, vector<32x32xf32>
    %cst_31 = arith.constant dense<0.000000e+00> : vector<8x32xf32>
    %90 = tpu.matmul %88, %89, %cst_31 {dimension_numbers = #tpu.dot_dimension_numbers<[1], [1], [0], [0], [0, 0, 1, 0], [], []>} : vector<8x32xf32>, vector<32x32xf32>, vector<8x32xf32> -> vector<8x32xf32>
    %c0_32 = arith.constant 0 : index
    %c0_33 = arith.constant 0 : index
    %91 = vector.load %arg6[%c0_32, %c0_33] : memref<1x32xf32, #tpu.memory_space<vmem>>, vector<1x32xf32>
    %92 = vector.broadcast %91 : vector<1x32xf32> to vector<8x32xf32>
    %93 = arith.addf %90, %92 : vector<8x32xf32>
    %c0_34 = arith.constant 0 : index
    %c0_35 = arith.constant 0 : index
    %94 = vector.load %arg7[%c0_34, %c0_35] : memref<1x32xf32, #tpu.memory_space<vmem>>, vector<1x32xf32>
    %c0_36 = arith.constant 0 : index
    %c0_37 = arith.constant 0 : index
    %95 = vector.load %arg8[%c0_36, %c0_37] : memref<1x32xf32, #tpu.memory_space<vmem>>, vector<1x32xf32>
    %96 = arith.addf %1, %93 : vector<8x32xf32>
    %cst_38 = arith.constant dense<0.000000e+00> : vector<8xf32>
    %97 = vector.multi_reduction <add>, %96, %cst_38 [1] : vector<8x32xf32> to vector<8xf32>
    %98 = vector.shape_cast %97 : vector<8xf32> to vector<8x1xf32>
    %cst_39 = arith.constant 3.200000e+01 : f32
    %99 = vector.broadcast %cst_39 : f32 to vector<8x1xf32>
    %100 = arith.divf %98, %99 : vector<8x1xf32>
    %101 = vector.broadcast %100 : vector<8x1xf32> to vector<8x32xf32>
    %102 = arith.subf %96, %101 : vector<8x32xf32>
    %103 = arith.mulf %102, %102 : vector<8x32xf32>
    %cst_40 = arith.constant dense<0.000000e+00> : vector<8xf32>
    %104 = vector.multi_reduction <add>, %103, %cst_40 [1] : vector<8x32xf32> to vector<8xf32>
    %105 = vector.shape_cast %104 : vector<8xf32> to vector<8x1xf32>
    %cst_41 = arith.constant 3.200000e+01 : f32
    %106 = vector.broadcast %cst_41 : f32 to vector<8x1xf32>
    %107 = arith.divf %105, %106 : vector<8x1xf32>
    %108 = vector.broadcast %100 : vector<8x1xf32> to vector<8x32xf32>
    %109 = arith.subf %96, %108 : vector<8x32xf32>
    %cst_42 = arith.constant 9.99999974E-6 : f32
    %110 = vector.broadcast %cst_42 : f32 to vector<8x1xf32>
    %111 = arith.addf %107, %110 : vector<8x1xf32>
    %112 = math.rsqrt %111 : vector<8x1xf32>
    %113 = vector.broadcast %112 : vector<8x1xf32> to vector<8x32xf32>
    %114 = arith.mulf %109, %113 : vector<8x32xf32>
    %115 = vector.broadcast %94 : vector<1x32xf32> to vector<8x32xf32>
    %116 = arith.mulf %114, %115 : vector<8x32xf32>
    %117 = vector.broadcast %95 : vector<1x32xf32> to vector<8x32xf32>
    %118 = arith.addf %116, %117 : vector<8x32xf32>
    %119 = vector.shape_cast %118 : vector<8x32xf32> to vector<1x8x32xf32>
    %c0_43 = arith.constant 0 : index
    %c0_44 = arith.constant 0 : index
    %c0_45 = arith.constant 0 : index
    %120 = vector.load %arg9[%c0_43, %c0_44, %c0_45] : memref<1x8x32xf32, #tpu.memory_space<vmem>>, vector<1x8x32xf32>
    tpu.vector_store %arg9[%c0_43, %c0_44, %c0_45], %119 {strides = array<i32>} : memref<1x8x32xf32, #tpu.memory_space<vmem>>, vector<1x8x32xf32>,
    return
  }
  func.func @transform_0(%arg0: i32) -> (i32, i32, i32) {
    %c0_i32 = arith.constant 0 : i32
    %c0_i32_0 = arith.constant 0 : i32
    %c0_i32_1 = arith.constant 0 : i32
    return %arg0, %c0_i32, %c0_i32_0 : i32, i32, i32
  }
  func.func @transform_1(%arg0: i32) -> (i32, i32, i32) {
    %c0_i32 = arith.constant 0 : i32
    %c0_i32_0 = arith.constant 0 : i32
    %c0_i32_1 = arith.constant 0 : i32
    return %arg0, %c0_i32, %c0_i32_0 : i32, i32, i32
  }
  func.func @transform_2(%arg0: i32) -> (i32, i32) {
    %c0_i32 = arith.constant 0 : i32
    %c0_i32_0 = arith.constant 0 : i32
    %c0_i32_1 = arith.constant 0 : i32
    return %c0_i32, %c0_i32_0 : i32, i32
  }
  func.func @transform_3(%arg0: i32) -> (i32, i32) {
    %c0_i32 = arith.constant 0 : i32
    %c0_i32_0 = arith.constant 0 : i32
    %c0_i32_1 = arith.constant 0 : i32
    return %c0_i32, %c0_i32_0 : i32, i32
  }
  func.func @transform_4(%arg0: i32) -> (i32, i32) {
    %c0_i32 = arith.constant 0 : i32
    %c0_i32_0 = arith.constant 0 : i32
    %c0_i32_1 = arith.constant 0 : i32
    return %c0_i32, %c0_i32_0 : i32, i32
  }
  func.func @transform_5(%arg0: i32) -> (i32, i32) {
    %c0_i32 = arith.constant 0 : i32
    %c0_i32_0 = arith.constant 0 : i32
    %c0_i32_1 = arith.constant 0 : i32
    return %c0_i32, %c0_i32_0 : i32, i32
  }
  func.func @transform_6(%arg0: i32) -> (i32, i32) {
    %c0_i32 = arith.constant 0 : i32
    %c0_i32_0 = arith.constant 0 : i32
    %c0_i32_1 = arith.constant 0 : i32
    return %c0_i32, %c0_i32_0 : i32, i32
  }
  func.func @transform_7(%arg0: i32) -> (i32, i32) {
    %c0_i32 = arith.constant 0 : i32
    %c0_i32_0 = arith.constant 0 : i32
    %c0_i32_1 = arith.constant 0 : i32
    return %c0_i32, %c0_i32_0 : i32, i32
  }
  func.func @transform_8(%arg0: i32) -> (i32, i32, i32) {
    %c0_i32 = arith.constant 0 : i32
    %c0_i32_0 = arith.constant 0 : i32
    %c0_i32_1 = arith.constant 0 : i32
    return %arg0, %c0_i32, %c0_i32_0 : i32, i32, i32
  }
}

module attributes {stable_mosaic.version = 11 : i64} {
  func.func @_self_mha_ln_kernel(%arg0: i32, %arg1: memref<1x8x32xf32, #tpu.memory_space<vmem>>, %arg2: memref<1x1x8xf32, #tpu.memory_space<vmem>>, %arg3: memref<96x32xf32, #tpu.memory_space<vmem>>, %arg4: memref<1x96xf32, #tpu.memory_space<vmem>>, %arg5: memref<32x32xf32, #tpu.memory_space<vmem>>, %arg6: memref<1x32xf32, #tpu.memory_space<vmem>>, %arg7: memref<1x32xf32, #tpu.memory_space<vmem>>, %arg8: memref<1x32xf32, #tpu.memory_space<vmem>>, %arg9: memref<1x8x32xf32, #tpu.memory_space<vmem>>) attributes {dimension_semantics = [#tpu.dimension_semantics<parallel>], iteration_bounds = array<i64: 2>, scalar_prefetch = 0 : i64, scratch_operands = 0 : i64, tpu.core_type = #tpu.core_type<tc>, window_params = [{transform_indices = @transform_0, window_bounds = array<i64: 1, 8, 32>}, {transform_indices = @transform_1, window_bounds = array<i64: 1, 1, 8>}, {pipeline_mode = #tpu.pipeline_mode<synchronous>, transform_indices = @transform_2, window_bounds = array<i64: 96, 32>}, {pipeline_mode = #tpu.pipeline_mode<synchronous>, transform_indices = @transform_3, window_bounds = array<i64: 1, 96>}, {pipeline_mode = #tpu.pipeline_mode<synchronous>, transform_indices = @transform_4, window_bounds = array<i64: 32, 32>}, {pipeline_mode = #tpu.pipeline_mode<synchronous>, transform_indices = @transform_5, window_bounds = array<i64: 1, 32>}, {pipeline_mode = #tpu.pipeline_mode<synchronous>, transform_indices = @transform_6, window_bounds = array<i64: 1, 32>}, {pipeline_mode = #tpu.pipeline_mode<synchronous>, transform_indices = @transform_7, window_bounds = array<i64: 1, 32>}, {transform_indices = @transform_8, window_bounds = array<i64: 1, 8, 32>}]} {
    %c0 = arith.constant 0 : index
    %c0_0 = arith.constant 0 : index
    %c0_1 = arith.constant 0 : index
    %0 = vector.load %arg1[%c0, %c0_0, %c0_1] : memref<1x8x32xf32, #tpu.memory_space<vmem>>, vector<1x8x32xf32>
    %1 = vector.shape_cast %0 : vector<1x8x32xf32> to vector<8x32xf32>
    %c0_2 = arith.constant 0 : index
    %c0_3 = arith.constant 0 : index
    %2 = vector.load %arg3[%c0_2, %c0_3] : memref<96x32xf32, #tpu.memory_space<vmem>>, vector<96x32xf32>
    %cst = arith.constant dense<0.000000e+00> : vector<8x96xf32>
    %3 = tpu.matmul %1, %2, %cst {dimension_numbers = #tpu.dot_dimension_numbers<[1], [1], [0], [0], [0, 0, 1, 0], [], []>} : vector<8x32xf32>, vector<96x32xf32>, vector<8x96xf32> -> vector<8x96xf32>
    %c0_4 = arith.constant 0 : index
    %c0_5 = arith.constant 0 : index
    %4 = vector.load %arg4[%c0_4, %c0_5] : memref<1x96xf32, #tpu.memory_space<vmem>>, vector<1x96xf32>
    %5 = vector.broadcast %4 : vector<1x96xf32> to vector<8x96xf32>
    %6 = arith.addf %3, %5 : vector<8x96xf32>
    %7 = vector.extract_strided_slice %6 {offsets = [0, 0], sizes = [8, 32], strides = [1, 1]} : vector<8x96xf32> to vector<8x32xf32>
    %8 = vector.extract_strided_slice %6 {offsets = [0, 32], sizes = [8, 32], strides = [1, 1]} : vector<8x96xf32> to vector<8x32xf32>
    %9 = vector.extract_strided_slice %6 {offsets = [0, 64], sizes = [8, 32], strides = [1, 1]} : vector<8x96xf32> to vector<8x32xf32>
    %c0_6 = arith.constant 0 : index
    %c0_7 = arith.constant 0 : index
    %c0_8 = arith.constant 0 : index
    %10 = vector.load %arg2[%c0_6, %c0_7, %c0_8] : memref<1x1x8xf32, #tpu.memory_space<vmem>>, vector<1x1x8xf32>
    %11 = vector.shape_cast %10 : vector<1x1x8xf32> to vector<1x8xf32>
    %12 = tpu.iota {dimensions = array<i32: 0>} : vector<8x8xi32>
    %13 = tpu.iota {dimensions = array<i32: 1>} : vector<8x8xi32>
    %14 = arith.cmpi sgt, %13, %12 : vector<8x8xi32>
    %cst_9 = arith.constant -1.000000e+09 : f32
    %cst_10 = arith.constant 0.000000e+00 : f32
    %15 = vector.broadcast %cst_9 : f32 to vector<8x8xf32>
    %16 = vector.broadcast %cst_10 : f32 to vector<8x8xf32>
    %17 = arith.select %14, %15, %16 : vector<8x8xi1>, vector<8x8xf32>
    %18 = vector.broadcast %11 : vector<1x8xf32> to vector<8x8xf32>
    %19 = arith.addf %18, %17 : vector<8x8xf32>
    %20 = vector.extract_strided_slice %7 {offsets = [0, 0], sizes = [8, 8], strides = [1, 1]} : vector<8x32xf32> to vector<8x8xf32>
    %21 = vector.extract_strided_slice %8 {offsets = [0, 0], sizes = [8, 8], strides = [1, 1]} : vector<8x32xf32> to vector<8x8xf32>
    %cst_11 = arith.constant dense<0.000000e+00> : vector<8x8xf32>
    %22 = tpu.matmul %20, %21, %cst_11 {dimension_numbers = #tpu.dot_dimension_numbers<[1], [1], [0], [0], [0, 0, 1, 0], [], []>} : vector<8x8xf32>, vector<8x8xf32>, vector<8x8xf32> -> vector<8x8xf32>
    %cst_12 = arith.constant 0.353553385 : f32
    %23 = vector.broadcast %cst_12 : f32 to vector<8x8xf32>
    %24 = arith.mulf %22, %23 : vector<8x8xf32>
    %25 = arith.addf %24, %19 : vector<8x8xf32>
    %cst_13 = arith.constant dense<0xFF800000> : vector<8xf32>
    %26 = vector.multi_reduction <maximumf>, %25, %cst_13 [1] : vector<8x8xf32> to vector<8xf32>
    %27 = vector.shape_cast %26 : vector<8xf32> to vector<8x1xf32>
    %28 = vector.broadcast %27 : vector<8x1xf32> to vector<8x8xf32>
    %29 = arith.subf %25, %28 : vector<8x8xf32>
    %30 = math.exp %29 : vector<8x8xf32>
    %cst_14 = arith.constant dense<0.000000e+00> : vector<8xf32>
    %31 = vector.multi_reduction <add>, %30, %cst_14 [1] : vector<8x8xf32> to vector<8xf32>
    %32 = vector.shape_cast %31 : vector<8xf32> to vector<8x1xf32>
    %33 = vector.extract_strided_slice %9 {offsets = [0, 0], sizes = [8, 8], strides = [1, 1]} : vector<8x32xf32> to vector<8x8xf32>
    %cst_15 = arith.constant dense<0.000000e+00> : vector<8x8xf32>
    %34 = tpu.matmul %30, %33, %cst_15 {dimension_numbers = #tpu.dot_dimension_numbers<[1], [0], [0], [1], [0, 0, 1, 1], [], []>} : vector<8x8xf32>, vector<8x8xf32>, vector<8x8xf32> -> vector<8x8xf32>
    %35 = tpu.reciprocal %32 {approx = true} : vector<8x1xf32> -> vector<8x1xf32>
    %36 = vector.broadcast %35 : vector<8x1xf32> to vector<8x8xf32>
    %37 = arith.mulf %34, %36 : vector<8x8xf32>
    %38 = vector.extract_strided_slice %7 {offsets = [0, 8], sizes = [8, 8], strides = [1, 1]} : vector<8x32xf32> to vector<8x8xf32>
    %39 = vector.extract_strided_slice %8 {offsets = [0, 8], sizes = [8, 8], strides = [1, 1]} : vector<8x32xf32> to vector<8x8xf32>
    %cst_16 = arith.constant dense<0.000000e+00> : vector<8x8xf32>
    %40 = tpu.matmul %38, %39, %cst_16 {dimension_numbers = #tpu.dot_dimension_numbers<[1], [1], [0], [0], [0, 0, 1, 0], [], []>} : vector<8x8xf32>, vector<8x8xf32>, vector<8x8xf32> -> vector<8x8xf32>
    %cst_17 = arith.constant 0.353553385 : f32
    %41 = vector.broadcast %cst_17 : f32 to vector<8x8xf32>
    %42 = arith.mulf %40, %41 : vector<8x8xf32>
    %43 = arith.addf %42, %19 : vector<8x8xf32>
    %cst_18 = arith.constant dense<0xFF800000> : vector<8xf32>
    %44 = vector.multi_reduction <maximumf>, %43, %cst_18 [1] : vector<8x8xf32> to vector<8xf32>
    %45 = vector.shape_cast %44 : vector<8xf32> to vector<8x1xf32>
    %46 = vector.broadcast %45 : vector<8x1xf32> to vector<8x8xf32>
    %47 = arith.subf %43, %46 : vector<8x8xf32>
    %48 = math.exp %47 : vector<8x8xf32>
    %cst_19 = arith.constant dense<0.000000e+00> : vector<8xf32>
    %49 = vector.multi_reduction <add>, %48, %cst_19 [1] : vector<8x8xf32> to vector<8xf32>
    %50 = vector.shape_cast %49 : vector<8xf32> to vector<8x1xf32>
    %51 = vector.extract_strided_slice %9 {offsets = [0, 8], sizes = [8, 8], strides = [1, 1]} : vector<8x32xf32> to vector<8x8xf32>
    %cst_20 = arith.constant dense<0.000000e+00> : vector<8x8xf32>
    %52 = tpu.matmul %48, %51, %cst_20 {dimension_numbers = #tpu.dot_dimension_numbers<[1], [0], [0], [1], [0, 0, 1, 1], [], []>} : vector<8x8xf32>, vector<8x8xf32>, vector<8x8xf32> -> vector<8x8xf32>
    %53 = tpu.reciprocal %50 {approx = true} : vector<8x1xf32> -> vector<8x1xf32>
    %54 = vector.broadcast %53 : vector<8x1xf32> to vector<8x8xf32>
    %55 = arith.mulf %52, %54 : vector<8x8xf32>
    %56 = vector.extract_strided_slice %7 {offsets = [0, 16], sizes = [8, 8], strides = [1, 1]} : vector<8x32xf32> to vector<8x8xf32>
    %57 = vector.extract_strided_slice %8 {offsets = [0, 16], sizes = [8, 8], strides = [1, 1]} : vector<8x32xf32> to vector<8x8xf32>
    %cst_21 = arith.constant dense<0.000000e+00> : vector<8x8xf32>
    %58 = tpu.matmul %56, %57, %cst_21 {dimension_numbers = #tpu.dot_dimension_numbers<[1], [1], [0], [0], [0, 0, 1, 0], [], []>} : vector<8x8xf32>, vector<8x8xf32>, vector<8x8xf32> -> vector<8x8xf32>
    %cst_22 = arith.constant 0.353553385 : f32
    %59 = vector.broadcast %cst_22 : f32 to vector<8x8xf32>
    %60 = arith.mulf %58, %59 : vector<8x8xf32>
    %61 = arith.addf %60, %19 : vector<8x8xf32>
    %cst_23 = arith.constant dense<0xFF800000> : vector<8xf32>
    %62 = vector.multi_reduction <maximumf>, %61, %cst_23 [1] : vector<8x8xf32> to vector<8xf32>
    %63 = vector.shape_cast %62 : vector<8xf32> to vector<8x1xf32>
    %64 = vector.broadcast %63 : vector<8x1xf32> to vector<8x8xf32>
    %65 = arith.subf %61, %64 : vector<8x8xf32>
    %66 = math.exp %65 : vector<8x8xf32>
    %cst_24 = arith.constant dense<0.000000e+00> : vector<8xf32>
    %67 = vector.multi_reduction <add>, %66, %cst_24 [1] : vector<8x8xf32> to vector<8xf32>
    %68 = vector.shape_cast %67 : vector<8xf32> to vector<8x1xf32>
    %69 = vector.extract_strided_slice %9 {offsets = [0, 16], sizes = [8, 8], strides = [1, 1]} : vector<8x32xf32> to vector<8x8xf32>
    %cst_25 = arith.constant dense<0.000000e+00> : vector<8x8xf32>
    %70 = tpu.matmul %66, %69, %cst_25 {dimension_numbers = #tpu.dot_dimension_numbers<[1], [0], [0], [1], [0, 0, 1, 1], [], []>} : vector<8x8xf32>, vector<8x8xf32>, vector<8x8xf32> -> vector<8x8xf32>
    %71 = tpu.reciprocal %68 {approx = true} : vector<8x1xf32> -> vector<8x1xf32>
    %72 = vector.broadcast %71 : vector<8x1xf32> to vector<8x8xf32>
    %73 = arith.mulf %70, %72 : vector<8x8xf32>
    %74 = vector.extract_strided_slice %7 {offsets = [0, 24], sizes = [8, 8], strides = [1, 1]} : vector<8x32xf32> to vector<8x8xf32>
    %75 = vector.extract_strided_slice %8 {offsets = [0, 24], sizes = [8, 8], strides = [1, 1]} : vector<8x32xf32> to vector<8x8xf32>
    %cst_26 = arith.constant dense<0.000000e+00> : vector<8x8xf32>
    %76 = tpu.matmul %74, %75, %cst_26 {dimension_numbers = #tpu.dot_dimension_numbers<[1], [1], [0], [0], [0, 0, 1, 0], [], []>} : vector<8x8xf32>, vector<8x8xf32>, vector<8x8xf32> -> vector<8x8xf32>
    %cst_27 = arith.constant 0.353553385 : f32
    %77 = vector.broadcast %cst_27 : f32 to vector<8x8xf32>
    %78 = arith.mulf %76, %77 : vector<8x8xf32>
    %79 = arith.addf %78, %19 : vector<8x8xf32>
    %cst_28 = arith.constant dense<0xFF800000> : vector<8xf32>
    %80 = vector.multi_reduction <maximumf>, %79, %cst_28 [1] : vector<8x8xf32> to vector<8xf32>
    %81 = vector.shape_cast %80 : vector<8xf32> to vector<8x1xf32>
    %82 = vector.broadcast %81 : vector<8x1xf32> to vector<8x8xf32>
    %83 = arith.subf %79, %82 : vector<8x8xf32>
    %84 = math.exp %83 : vector<8x8xf32>
    %cst_29 = arith.constant dense<0.000000e+00> : vector<8xf32>
    %85 = vector.multi_reduction <add>, %84, %cst_29 [1] : vector<8x8xf32> to vector<8xf32>
    %86 = vector.shape_cast %85 : vector<8xf32> to vector<8x1xf32>
    %87 = vector.extract_strided_slice %9 {offsets = [0, 24], sizes = [8, 8], strides = [1, 1]} : vector<8x32xf32> to vector<8x8xf32>
    %cst_30 = arith.constant dense<0.000000e+00> : vector<8x8xf32>
    %88 = tpu.matmul %84, %87, %cst_30 {dimension_numbers = #tpu.dot_dimension_numbers<[1], [0], [0], [1], [0, 0, 1, 1], [], []>} : vector<8x8xf32>, vector<8x8xf32>, vector<8x8xf32> -> vector<8x8xf32>
    %89 = tpu.reciprocal %86 {approx = true} : vector<8x1xf32> -> vector<8x1xf32>
    %90 = vector.broadcast %89 : vector<8x1xf32> to vector<8x8xf32>
    %91 = arith.mulf %88, %90 : vector<8x8xf32>
    %92 = tpu.concatenate %37, %55, %73, %91 in 1 : vector<8x8xf32>, vector<8x8xf32>, vector<8x8xf32>, vector<8x8xf32> -> vector<8x32xf32>
    %c0_31 = arith.constant 0 : index
    %c0_32 = arith.constant 0 : index
    %93 = vector.load %arg5[%c0_31, %c0_32] : memref<32x32xf32, #tpu.memory_space<vmem>>, vector<32x32xf32>
    %cst_33 = arith.constant dense<0.000000e+00> : vector<8x32xf32>
    %94 = tpu.matmul %92, %93, %cst_33 {dimension_numbers = #tpu.dot_dimension_numbers<[1], [1], [0], [0], [0, 0, 1, 0], [], []>} : vector<8x32xf32>, vector<32x32xf32>, vector<8x32xf32> -> vector<8x32xf32>
    %c0_34 = arith.constant 0 : index
    %c0_35 = arith.constant 0 : index
    %95 = vector.load %arg6[%c0_34, %c0_35] : memref<1x32xf32, #tpu.memory_space<vmem>>, vector<1x32xf32>
    %96 = vector.broadcast %95 : vector<1x32xf32> to vector<8x32xf32>
    %97 = arith.addf %94, %96 : vector<8x32xf32>
    %c0_36 = arith.constant 0 : index
    %c0_37 = arith.constant 0 : index
    %98 = vector.load %arg7[%c0_36, %c0_37] : memref<1x32xf32, #tpu.memory_space<vmem>>, vector<1x32xf32>
    %c0_38 = arith.constant 0 : index
    %c0_39 = arith.constant 0 : index
    %99 = vector.load %arg8[%c0_38, %c0_39] : memref<1x32xf32, #tpu.memory_space<vmem>>, vector<1x32xf32>
    %100 = arith.addf %1, %97 : vector<8x32xf32>
    %cst_40 = arith.constant dense<0.000000e+00> : vector<8xf32>
    %101 = vector.multi_reduction <add>, %100, %cst_40 [1] : vector<8x32xf32> to vector<8xf32>
    %102 = vector.shape_cast %101 : vector<8xf32> to vector<8x1xf32>
    %cst_41 = arith.constant 3.200000e+01 : f32
    %103 = vector.broadcast %cst_41 : f32 to vector<8x1xf32>
    %104 = arith.divf %102, %103 : vector<8x1xf32>
    %105 = vector.broadcast %104 : vector<8x1xf32> to vector<8x32xf32>
    %106 = arith.subf %100, %105 : vector<8x32xf32>
    %107 = arith.mulf %106, %106 : vector<8x32xf32>
    %cst_42 = arith.constant dense<0.000000e+00> : vector<8xf32>
    %108 = vector.multi_reduction <add>, %107, %cst_42 [1] : vector<8x32xf32> to vector<8xf32>
    %109 = vector.shape_cast %108 : vector<8xf32> to vector<8x1xf32>
    %cst_43 = arith.constant 3.200000e+01 : f32
    %110 = vector.broadcast %cst_43 : f32 to vector<8x1xf32>
    %111 = arith.divf %109, %110 : vector<8x1xf32>
    %112 = vector.broadcast %104 : vector<8x1xf32> to vector<8x32xf32>
    %113 = arith.subf %100, %112 : vector<8x32xf32>
    %cst_44 = arith.constant 9.99999974E-6 : f32
    %114 = vector.broadcast %cst_44 : f32 to vector<8x1xf32>
    %115 = arith.addf %111, %114 : vector<8x1xf32>
    %116 = math.rsqrt %115 : vector<8x1xf32>
    %117 = vector.broadcast %116 : vector<8x1xf32> to vector<8x32xf32>
    %118 = arith.mulf %113, %117 : vector<8x32xf32>
    %119 = vector.broadcast %98 : vector<1x32xf32> to vector<8x32xf32>
    %120 = arith.mulf %118, %119 : vector<8x32xf32>
    %121 = vector.broadcast %99 : vector<1x32xf32> to vector<8x32xf32>
    %122 = arith.addf %120, %121 : vector<8x32xf32>
    %123 = vector.shape_cast %122 : vector<8x32xf32> to vector<1x8x32xf32>
    %c0_45 = arith.constant 0 : index
    %c0_46 = arith.constant 0 : index
    %c0_47 = arith.constant 0 : index
    %124 = vector.load %arg9[%c0_45, %c0_46, %c0_47] : memref<1x8x32xf32, #tpu.memory_space<vmem>>, vector<1x8x32xf32>
    tpu.vector_store %arg9[%c0_45, %c0_46, %c0_47], %123 {strides = array<i32>} : memref<1x8x32xf32, #tpu.memory_space<vmem>>, vector<1x8x32xf32>,
    return
  }
  func.func @transform_0(%arg0: i32) -> (i32, i32, i32) {
    %c0_i32 = arith.constant 0 : i32
    %c0_i32_0 = arith.constant 0 : i32
    %c0_i32_1 = arith.constant 0 : i32
    return %arg0, %c0_i32, %c0_i32_0 : i32, i32, i32
  }
  func.func @transform_1(%arg0: i32) -> (i32, i32, i32) {
    %c0_i32 = arith.constant 0 : i32
    %c0_i32_0 = arith.constant 0 : i32
    %c0_i32_1 = arith.constant 0 : i32
    return %arg0, %c0_i32, %c0_i32_0 : i32, i32, i32
  }
  func.func @transform_2(%arg0: i32) -> (i32, i32) {
    %c0_i32 = arith.constant 0 : i32
    %c0_i32_0 = arith.constant 0 : i32
    %c0_i32_1 = arith.constant 0 : i32
    return %c0_i32, %c0_i32_0 : i32, i32
  }
  func.func @transform_3(%arg0: i32) -> (i32, i32) {
    %c0_i32 = arith.constant 0 : i32
    %c0_i32_0 = arith.constant 0 : i32
    %c0_i32_1 = arith.constant 0 : i32
    return %c0_i32, %c0_i32_0 : i32, i32
  }
  func.func @transform_4(%arg0: i32) -> (i32, i32) {
    %c0_i32 = arith.constant 0 : i32
    %c0_i32_0 = arith.constant 0 : i32
    %c0_i32_1 = arith.constant 0 : i32
    return %c0_i32, %c0_i32_0 : i32, i32
  }
  func.func @transform_5(%arg0: i32) -> (i32, i32) {
    %c0_i32 = arith.constant 0 : i32
    %c0_i32_0 = arith.constant 0 : i32
    %c0_i32_1 = arith.constant 0 : i32
    return %c0_i32, %c0_i32_0 : i32, i32
  }
  func.func @transform_6(%arg0: i32) -> (i32, i32) {
    %c0_i32 = arith.constant 0 : i32
    %c0_i32_0 = arith.constant 0 : i32
    %c0_i32_1 = arith.constant 0 : i32
    return %c0_i32, %c0_i32_0 : i32, i32
  }
  func.func @transform_7(%arg0: i32) -> (i32, i32) {
    %c0_i32 = arith.constant 0 : i32
    %c0_i32_0 = arith.constant 0 : i32
    %c0_i32_1 = arith.constant 0 : i32
    return %c0_i32, %c0_i32_0 : i32, i32
  }
  func.func @transform_8(%arg0: i32) -> (i32, i32, i32) {
    %c0_i32 = arith.constant 0 : i32
    %c0_i32_0 = arith.constant 0 : i32
    %c0_i32_1 = arith.constant 0 : i32
    return %arg0, %c0_i32, %c0_i32_0 : i32, i32, i32
  }
}

module attributes {stable_mosaic.version = 11 : i64} {
  func.func @_cross_mha_ln_kernel(%arg0: i32, %arg1: memref<1x8x32xf32, #tpu.memory_space<vmem>>, %arg2: memref<1x8x32xf32, #tpu.memory_space<vmem>>, %arg3: memref<1x1x8xf32, #tpu.memory_space<vmem>>, %arg4: memref<96x32xf32, #tpu.memory_space<vmem>>, %arg5: memref<1x96xf32, #tpu.memory_space<vmem>>, %arg6: memref<32x32xf32, #tpu.memory_space<vmem>>, %arg7: memref<1x32xf32, #tpu.memory_space<vmem>>, %arg8: memref<1x32xf32, #tpu.memory_space<vmem>>, %arg9: memref<1x32xf32, #tpu.memory_space<vmem>>, %arg10: memref<1x8x32xf32, #tpu.memory_space<vmem>>) attributes {dimension_semantics = [#tpu.dimension_semantics<parallel>], iteration_bounds = array<i64: 2>, scalar_prefetch = 0 : i64, scratch_operands = 0 : i64, tpu.core_type = #tpu.core_type<tc>, window_params = [{transform_indices = @transform_0, window_bounds = array<i64: 1, 8, 32>}, {transform_indices = @transform_1, window_bounds = array<i64: 1, 8, 32>}, {transform_indices = @transform_2, window_bounds = array<i64: 1, 1, 8>}, {pipeline_mode = #tpu.pipeline_mode<synchronous>, transform_indices = @transform_3, window_bounds = array<i64: 96, 32>}, {pipeline_mode = #tpu.pipeline_mode<synchronous>, transform_indices = @transform_4, window_bounds = array<i64: 1, 96>}, {pipeline_mode = #tpu.pipeline_mode<synchronous>, transform_indices = @transform_5, window_bounds = array<i64: 32, 32>}, {pipeline_mode = #tpu.pipeline_mode<synchronous>, transform_indices = @transform_6, window_bounds = array<i64: 1, 32>}, {pipeline_mode = #tpu.pipeline_mode<synchronous>, transform_indices = @transform_7, window_bounds = array<i64: 1, 32>}, {pipeline_mode = #tpu.pipeline_mode<synchronous>, transform_indices = @transform_8, window_bounds = array<i64: 1, 32>}, {transform_indices = @transform_9, window_bounds = array<i64: 1, 8, 32>}]} {
    %c0 = arith.constant 0 : index
    %c0_0 = arith.constant 0 : index
    %c0_1 = arith.constant 0 : index
    %0 = vector.load %arg1[%c0, %c0_0, %c0_1] : memref<1x8x32xf32, #tpu.memory_space<vmem>>, vector<1x8x32xf32>
    %1 = vector.shape_cast %0 : vector<1x8x32xf32> to vector<8x32xf32>
    %c0_2 = arith.constant 0 : index
    %c0_3 = arith.constant 0 : index
    %c0_4 = arith.constant 0 : index
    %2 = vector.load %arg2[%c0_2, %c0_3, %c0_4] : memref<1x8x32xf32, #tpu.memory_space<vmem>>, vector<1x8x32xf32>
    %3 = vector.shape_cast %2 : vector<1x8x32xf32> to vector<8x32xf32>
    %c0_5 = arith.constant 0 : index
    %c0_6 = arith.constant 0 : index
    %4 = vector.load %arg4[%c0_5, %c0_6] : memref<96x32xf32, #tpu.memory_space<vmem>>, vector<96x32xf32>
    %c0_7 = arith.constant 0 : index
    %c0_8 = arith.constant 0 : index
    %5 = vector.load %arg5[%c0_7, %c0_8] : memref<1x96xf32, #tpu.memory_space<vmem>>, vector<1x96xf32>
    %6 = vector.extract_strided_slice %4 {offsets = [0, 0], sizes = [32, 32], strides = [1, 1]} : vector<96x32xf32> to vector<32x32xf32>
    %cst = arith.constant dense<0.000000e+00> : vector<8x32xf32>
    %7 = tpu.matmul %1, %6, %cst {dimension_numbers = #tpu.dot_dimension_numbers<[1], [1], [0], [0], [0, 0, 1, 0], [], []>} : vector<8x32xf32>, vector<32x32xf32>, vector<8x32xf32> -> vector<8x32xf32>
    %8 = vector.extract_strided_slice %5 {offsets = [0, 0], sizes = [1, 32], strides = [1, 1]} : vector<1x96xf32> to vector<1x32xf32>
    %9 = vector.broadcast %8 : vector<1x32xf32> to vector<8x32xf32>
    %10 = arith.addf %7, %9 : vector<8x32xf32>
    %11 = vector.extract_strided_slice %4 {offsets = [32, 0], sizes = [64, 32], strides = [1, 1]} : vector<96x32xf32> to vector<64x32xf32>
    %cst_9 = arith.constant dense<0.000000e+00> : vector<8x64xf32>
    %12 = tpu.matmul %3, %11, %cst_9 {dimension_numbers = #tpu.dot_dimension_numbers<[1], [1], [0], [0], [0, 0, 1, 0], [], []>} : vector<8x32xf32>, vector<64x32xf32>, vector<8x64xf32> -> vector<8x64xf32>
    %13 = vector.extract_strided_slice %5 {offsets = [0, 32], sizes = [1, 64], strides = [1, 1]} : vector<1x96xf32> to vector<1x64xf32>
    %14 = vector.broadcast %13 : vector<1x64xf32> to vector<8x64xf32>
    %15 = arith.addf %12, %14 : vector<8x64xf32>
    %16 = vector.extract_strided_slice %15 {offsets = [0, 0], sizes = [8, 32], strides = [1, 1]} : vector<8x64xf32> to vector<8x32xf32>
    %17 = vector.extract_strided_slice %15 {offsets = [0, 32], sizes = [8, 32], strides = [1, 1]} : vector<8x64xf32> to vector<8x32xf32>
    %c0_10 = arith.constant 0 : index
    %c0_11 = arith.constant 0 : index
    %c0_12 = arith.constant 0 : index
    %18 = vector.load %arg3[%c0_10, %c0_11, %c0_12] : memref<1x1x8xf32, #tpu.memory_space<vmem>>, vector<1x1x8xf32>
    %19 = vector.shape_cast %18 : vector<1x1x8xf32> to vector<1x8xf32>
    %20 = vector.extract_strided_slice %10 {offsets = [0, 0], sizes = [8, 8], strides = [1, 1]} : vector<8x32xf32> to vector<8x8xf32>
    %21 = vector.extract_strided_slice %16 {offsets = [0, 0], sizes = [8, 8], strides = [1, 1]} : vector<8x32xf32> to vector<8x8xf32>
    %cst_13 = arith.constant dense<0.000000e+00> : vector<8x8xf32>
    %22 = tpu.matmul %20, %21, %cst_13 {dimension_numbers = #tpu.dot_dimension_numbers<[1], [1], [0], [0], [0, 0, 1, 0], [], []>} : vector<8x8xf32>, vector<8x8xf32>, vector<8x8xf32> -> vector<8x8xf32>
    %cst_14 = arith.constant 0.353553385 : f32
    %23 = vector.broadcast %cst_14 : f32 to vector<8x8xf32>
    %24 = arith.mulf %22, %23 : vector<8x8xf32>
    %25 = vector.broadcast %19 : vector<1x8xf32> to vector<8x8xf32>
    %26 = arith.addf %24, %25 : vector<8x8xf32>
    %cst_15 = arith.constant dense<0xFF800000> : vector<8xf32>
    %27 = vector.multi_reduction <maximumf>, %26, %cst_15 [1] : vector<8x8xf32> to vector<8xf32>
    %28 = vector.shape_cast %27 : vector<8xf32> to vector<8x1xf32>
    %29 = vector.broadcast %28 : vector<8x1xf32> to vector<8x8xf32>
    %30 = arith.subf %26, %29 : vector<8x8xf32>
    %31 = math.exp %30 : vector<8x8xf32>
    %cst_16 = arith.constant dense<0.000000e+00> : vector<8xf32>
    %32 = vector.multi_reduction <add>, %31, %cst_16 [1] : vector<8x8xf32> to vector<8xf32>
    %33 = vector.shape_cast %32 : vector<8xf32> to vector<8x1xf32>
    %34 = vector.extract_strided_slice %17 {offsets = [0, 0], sizes = [8, 8], strides = [1, 1]} : vector<8x32xf32> to vector<8x8xf32>
    %cst_17 = arith.constant dense<0.000000e+00> : vector<8x8xf32>
    %35 = tpu.matmul %31, %34, %cst_17 {dimension_numbers = #tpu.dot_dimension_numbers<[1], [0], [0], [1], [0, 0, 1, 1], [], []>} : vector<8x8xf32>, vector<8x8xf32>, vector<8x8xf32> -> vector<8x8xf32>
    %36 = tpu.reciprocal %33 {approx = true} : vector<8x1xf32> -> vector<8x1xf32>
    %37 = vector.broadcast %36 : vector<8x1xf32> to vector<8x8xf32>
    %38 = arith.mulf %35, %37 : vector<8x8xf32>
    %39 = vector.extract_strided_slice %10 {offsets = [0, 8], sizes = [8, 8], strides = [1, 1]} : vector<8x32xf32> to vector<8x8xf32>
    %40 = vector.extract_strided_slice %16 {offsets = [0, 8], sizes = [8, 8], strides = [1, 1]} : vector<8x32xf32> to vector<8x8xf32>
    %cst_18 = arith.constant dense<0.000000e+00> : vector<8x8xf32>
    %41 = tpu.matmul %39, %40, %cst_18 {dimension_numbers = #tpu.dot_dimension_numbers<[1], [1], [0], [0], [0, 0, 1, 0], [], []>} : vector<8x8xf32>, vector<8x8xf32>, vector<8x8xf32> -> vector<8x8xf32>
    %cst_19 = arith.constant 0.353553385 : f32
    %42 = vector.broadcast %cst_19 : f32 to vector<8x8xf32>
    %43 = arith.mulf %41, %42 : vector<8x8xf32>
    %44 = vector.broadcast %19 : vector<1x8xf32> to vector<8x8xf32>
    %45 = arith.addf %43, %44 : vector<8x8xf32>
    %cst_20 = arith.constant dense<0xFF800000> : vector<8xf32>
    %46 = vector.multi_reduction <maximumf>, %45, %cst_20 [1] : vector<8x8xf32> to vector<8xf32>
    %47 = vector.shape_cast %46 : vector<8xf32> to vector<8x1xf32>
    %48 = vector.broadcast %47 : vector<8x1xf32> to vector<8x8xf32>
    %49 = arith.subf %45, %48 : vector<8x8xf32>
    %50 = math.exp %49 : vector<8x8xf32>
    %cst_21 = arith.constant dense<0.000000e+00> : vector<8xf32>
    %51 = vector.multi_reduction <add>, %50, %cst_21 [1] : vector<8x8xf32> to vector<8xf32>
    %52 = vector.shape_cast %51 : vector<8xf32> to vector<8x1xf32>
    %53 = vector.extract_strided_slice %17 {offsets = [0, 8], sizes = [8, 8], strides = [1, 1]} : vector<8x32xf32> to vector<8x8xf32>
    %cst_22 = arith.constant dense<0.000000e+00> : vector<8x8xf32>
    %54 = tpu.matmul %50, %53, %cst_22 {dimension_numbers = #tpu.dot_dimension_numbers<[1], [0], [0], [1], [0, 0, 1, 1], [], []>} : vector<8x8xf32>, vector<8x8xf32>, vector<8x8xf32> -> vector<8x8xf32>
    %55 = tpu.reciprocal %52 {approx = true} : vector<8x1xf32> -> vector<8x1xf32>
    %56 = vector.broadcast %55 : vector<8x1xf32> to vector<8x8xf32>
    %57 = arith.mulf %54, %56 : vector<8x8xf32>
    %58 = vector.extract_strided_slice %10 {offsets = [0, 16], sizes = [8, 8], strides = [1, 1]} : vector<8x32xf32> to vector<8x8xf32>
    %59 = vector.extract_strided_slice %16 {offsets = [0, 16], sizes = [8, 8], strides = [1, 1]} : vector<8x32xf32> to vector<8x8xf32>
    %cst_23 = arith.constant dense<0.000000e+00> : vector<8x8xf32>
    %60 = tpu.matmul %58, %59, %cst_23 {dimension_numbers = #tpu.dot_dimension_numbers<[1], [1], [0], [0], [0, 0, 1, 0], [], []>} : vector<8x8xf32>, vector<8x8xf32>, vector<8x8xf32> -> vector<8x8xf32>
    %cst_24 = arith.constant 0.353553385 : f32
    %61 = vector.broadcast %cst_24 : f32 to vector<8x8xf32>
    %62 = arith.mulf %60, %61 : vector<8x8xf32>
    %63 = vector.broadcast %19 : vector<1x8xf32> to vector<8x8xf32>
    %64 = arith.addf %62, %63 : vector<8x8xf32>
    %cst_25 = arith.constant dense<0xFF800000> : vector<8xf32>
    %65 = vector.multi_reduction <maximumf>, %64, %cst_25 [1] : vector<8x8xf32> to vector<8xf32>
    %66 = vector.shape_cast %65 : vector<8xf32> to vector<8x1xf32>
    %67 = vector.broadcast %66 : vector<8x1xf32> to vector<8x8xf32>
    %68 = arith.subf %64, %67 : vector<8x8xf32>
    %69 = math.exp %68 : vector<8x8xf32>
    %cst_26 = arith.constant dense<0.000000e+00> : vector<8xf32>
    %70 = vector.multi_reduction <add>, %69, %cst_26 [1] : vector<8x8xf32> to vector<8xf32>
    %71 = vector.shape_cast %70 : vector<8xf32> to vector<8x1xf32>
    %72 = vector.extract_strided_slice %17 {offsets = [0, 16], sizes = [8, 8], strides = [1, 1]} : vector<8x32xf32> to vector<8x8xf32>
    %cst_27 = arith.constant dense<0.000000e+00> : vector<8x8xf32>
    %73 = tpu.matmul %69, %72, %cst_27 {dimension_numbers = #tpu.dot_dimension_numbers<[1], [0], [0], [1], [0, 0, 1, 1], [], []>} : vector<8x8xf32>, vector<8x8xf32>, vector<8x8xf32> -> vector<8x8xf32>
    %74 = tpu.reciprocal %71 {approx = true} : vector<8x1xf32> -> vector<8x1xf32>
    %75 = vector.broadcast %74 : vector<8x1xf32> to vector<8x8xf32>
    %76 = arith.mulf %73, %75 : vector<8x8xf32>
    %77 = vector.extract_strided_slice %10 {offsets = [0, 24], sizes = [8, 8], strides = [1, 1]} : vector<8x32xf32> to vector<8x8xf32>
    %78 = vector.extract_strided_slice %16 {offsets = [0, 24], sizes = [8, 8], strides = [1, 1]} : vector<8x32xf32> to vector<8x8xf32>
    %cst_28 = arith.constant dense<0.000000e+00> : vector<8x8xf32>
    %79 = tpu.matmul %77, %78, %cst_28 {dimension_numbers = #tpu.dot_dimension_numbers<[1], [1], [0], [0], [0, 0, 1, 0], [], []>} : vector<8x8xf32>, vector<8x8xf32>, vector<8x8xf32> -> vector<8x8xf32>
    %cst_29 = arith.constant 0.353553385 : f32
    %80 = vector.broadcast %cst_29 : f32 to vector<8x8xf32>
    %81 = arith.mulf %79, %80 : vector<8x8xf32>
    %82 = vector.broadcast %19 : vector<1x8xf32> to vector<8x8xf32>
    %83 = arith.addf %81, %82 : vector<8x8xf32>
    %cst_30 = arith.constant dense<0xFF800000> : vector<8xf32>
    %84 = vector.multi_reduction <maximumf>, %83, %cst_30 [1] : vector<8x8xf32> to vector<8xf32>
    %85 = vector.shape_cast %84 : vector<8xf32> to vector<8x1xf32>
    %86 = vector.broadcast %85 : vector<8x1xf32> to vector<8x8xf32>
    %87 = arith.subf %83, %86 : vector<8x8xf32>
    %88 = math.exp %87 : vector<8x8xf32>
    %cst_31 = arith.constant dense<0.000000e+00> : vector<8xf32>
    %89 = vector.multi_reduction <add>, %88, %cst_31 [1] : vector<8x8xf32> to vector<8xf32>
    %90 = vector.shape_cast %89 : vector<8xf32> to vector<8x1xf32>
    %91 = vector.extract_strided_slice %17 {offsets = [0, 24], sizes = [8, 8], strides = [1, 1]} : vector<8x32xf32> to vector<8x8xf32>
    %cst_32 = arith.constant dense<0.000000e+00> : vector<8x8xf32>
    %92 = tpu.matmul %88, %91, %cst_32 {dimension_numbers = #tpu.dot_dimension_numbers<[1], [0], [0], [1], [0, 0, 1, 1], [], []>} : vector<8x8xf32>, vector<8x8xf32>, vector<8x8xf32> -> vector<8x8xf32>
    %93 = tpu.reciprocal %90 {approx = true} : vector<8x1xf32> -> vector<8x1xf32>
    %94 = vector.broadcast %93 : vector<8x1xf32> to vector<8x8xf32>
    %95 = arith.mulf %92, %94 : vector<8x8xf32>
    %96 = tpu.concatenate %38, %57, %76, %95 in 1 : vector<8x8xf32>, vector<8x8xf32>, vector<8x8xf32>, vector<8x8xf32> -> vector<8x32xf32>
    %c0_33 = arith.constant 0 : index
    %c0_34 = arith.constant 0 : index
    %97 = vector.load %arg6[%c0_33, %c0_34] : memref<32x32xf32, #tpu.memory_space<vmem>>, vector<32x32xf32>
    %cst_35 = arith.constant dense<0.000000e+00> : vector<8x32xf32>
    %98 = tpu.matmul %96, %97, %cst_35 {dimension_numbers = #tpu.dot_dimension_numbers<[1], [1], [0], [0], [0, 0, 1, 0], [], []>} : vector<8x32xf32>, vector<32x32xf32>, vector<8x32xf32> -> vector<8x32xf32>
    %c0_36 = arith.constant 0 : index
    %c0_37 = arith.constant 0 : index
    %99 = vector.load %arg7[%c0_36, %c0_37] : memref<1x32xf32, #tpu.memory_space<vmem>>, vector<1x32xf32>
    %100 = vector.broadcast %99 : vector<1x32xf32> to vector<8x32xf32>
    %101 = arith.addf %98, %100 : vector<8x32xf32>
    %c0_38 = arith.constant 0 : index
    %c0_39 = arith.constant 0 : index
    %102 = vector.load %arg8[%c0_38, %c0_39] : memref<1x32xf32, #tpu.memory_space<vmem>>, vector<1x32xf32>
    %c0_40 = arith.constant 0 : index
    %c0_41 = arith.constant 0 : index
    %103 = vector.load %arg9[%c0_40, %c0_41] : memref<1x32xf32, #tpu.memory_space<vmem>>, vector<1x32xf32>
    %104 = arith.addf %1, %101 : vector<8x32xf32>
    %cst_42 = arith.constant dense<0.000000e+00> : vector<8xf32>
    %105 = vector.multi_reduction <add>, %104, %cst_42 [1] : vector<8x32xf32> to vector<8xf32>
    %106 = vector.shape_cast %105 : vector<8xf32> to vector<8x1xf32>
    %cst_43 = arith.constant 3.200000e+01 : f32
    %107 = vector.broadcast %cst_43 : f32 to vector<8x1xf32>
    %108 = arith.divf %106, %107 : vector<8x1xf32>
    %109 = vector.broadcast %108 : vector<8x1xf32> to vector<8x32xf32>
    %110 = arith.subf %104, %109 : vector<8x32xf32>
    %111 = arith.mulf %110, %110 : vector<8x32xf32>
    %cst_44 = arith.constant dense<0.000000e+00> : vector<8xf32>
    %112 = vector.multi_reduction <add>, %111, %cst_44 [1] : vector<8x32xf32> to vector<8xf32>
    %113 = vector.shape_cast %112 : vector<8xf32> to vector<8x1xf32>
    %cst_45 = arith.constant 3.200000e+01 : f32
    %114 = vector.broadcast %cst_45 : f32 to vector<8x1xf32>
    %115 = arith.divf %113, %114 : vector<8x1xf32>
    %116 = vector.broadcast %108 : vector<8x1xf32> to vector<8x32xf32>
    %117 = arith.subf %104, %116 : vector<8x32xf32>
    %cst_46 = arith.constant 9.99999974E-6 : f32
    %118 = vector.broadcast %cst_46 : f32 to vector<8x1xf32>
    %119 = arith.addf %115, %118 : vector<8x1xf32>
    %120 = math.rsqrt %119 : vector<8x1xf32>
    %121 = vector.broadcast %120 : vector<8x1xf32> to vector<8x32xf32>
    %122 = arith.mulf %117, %121 : vector<8x32xf32>
    %123 = vector.broadcast %102 : vector<1x32xf32> to vector<8x32xf32>
    %124 = arith.mulf %122, %123 : vector<8x32xf32>
    %125 = vector.broadcast %103 : vector<1x32xf32> to vector<8x32xf32>
    %126 = arith.addf %124, %125 : vector<8x32xf32>
    %127 = vector.shape_cast %126 : vector<8x32xf32> to vector<1x8x32xf32>
    %c0_47 = arith.constant 0 : index
    %c0_48 = arith.constant 0 : index
    %c0_49 = arith.constant 0 : index
    %128 = vector.load %arg10[%c0_47, %c0_48, %c0_49] : memref<1x8x32xf32, #tpu.memory_space<vmem>>, vector<1x8x32xf32>
    tpu.vector_store %arg10[%c0_47, %c0_48, %c0_49], %127 {strides = array<i32>} : memref<1x8x32xf32, #tpu.memory_space<vmem>>, vector<1x8x32xf32>,
    return
  }
  func.func @transform_0(%arg0: i32) -> (i32, i32, i32) {
    %c0_i32 = arith.constant 0 : i32
    %c0_i32_0 = arith.constant 0 : i32
    %c0_i32_1 = arith.constant 0 : i32
    return %arg0, %c0_i32, %c0_i32_0 : i32, i32, i32
  }
  func.func @transform_1(%arg0: i32) -> (i32, i32, i32) {
    %c0_i32 = arith.constant 0 : i32
    %c0_i32_0 = arith.constant 0 : i32
    %c0_i32_1 = arith.constant 0 : i32
    return %arg0, %c0_i32, %c0_i32_0 : i32, i32, i32
  }
  func.func @transform_2(%arg0: i32) -> (i32, i32, i32) {
    %c0_i32 = arith.constant 0 : i32
    %c0_i32_0 = arith.constant 0 : i32
    %c0_i32_1 = arith.constant 0 : i32
    return %arg0, %c0_i32, %c0_i32_0 : i32, i32, i32
  }
  func.func @transform_3(%arg0: i32) -> (i32, i32) {
    %c0_i32 = arith.constant 0 : i32
    %c0_i32_0 = arith.constant 0 : i32
    %c0_i32_1 = arith.constant 0 : i32
    return %c0_i32, %c0_i32_0 : i32, i32
  }
  func.func @transform_4(%arg0: i32) -> (i32, i32) {
    %c0_i32 = arith.constant 0 : i32
    %c0_i32_0 = arith.constant 0 : i32
    %c0_i32_1 = arith.constant 0 : i32
    return %c0_i32, %c0_i32_0 : i32, i32
  }
  func.func @transform_5(%arg0: i32) -> (i32, i32) {
    %c0_i32 = arith.constant 0 : i32
    %c0_i32_0 = arith.constant 0 : i32
    %c0_i32_1 = arith.constant 0 : i32
    return %c0_i32, %c0_i32_0 : i32, i32
  }
  func.func @transform_6(%arg0: i32) -> (i32, i32) {
    %c0_i32 = arith.constant 0 : i32
    %c0_i32_0 = arith.constant 0 : i32
    %c0_i32_1 = arith.constant 0 : i32
    return %c0_i32, %c0_i32_0 : i32, i32
  }
  func.func @transform_7(%arg0: i32) -> (i32, i32) {
    %c0_i32 = arith.constant 0 : i32
    %c0_i32_0 = arith.constant 0 : i32
    %c0_i32_1 = arith.constant 0 : i32
    return %c0_i32, %c0_i32_0 : i32, i32
  }
  func.func @transform_8(%arg0: i32) -> (i32, i32) {
    %c0_i32 = arith.constant 0 : i32
    %c0_i32_0 = arith.constant 0 : i32
    %c0_i32_1 = arith.constant 0 : i32
    return %c0_i32, %c0_i32_0 : i32, i32
  }
  func.func @transform_9(%arg0: i32) -> (i32, i32, i32) {
    %c0_i32 = arith.constant 0 : i32
    %c0_i32_0 = arith.constant 0 : i32
    %c0_i32_1 = arith.constant 0 : i32
    return %arg0, %c0_i32, %c0_i32_0 : i32, i32, i32
  }
}

module attributes {stable_mosaic.version = 11 : i64} {
  func.func @_linear_kernel(%arg0: i32, %arg1: i32, %arg2: i32, %arg3: memref<16x32xf32, #tpu.memory_space<vmem>>, %arg4: memref<128x32xf32, #tpu.memory_space<vmem>>, %arg5: memref<1x128xf32, #tpu.memory_space<vmem>>, %arg6: memref<16x128xf32, #tpu.memory_space<vmem>>, %arg7: memref<16x128xf32, #tpu.memory_space<vmem>>) attributes {dimension_semantics = [#tpu.dimension_semantics<parallel>, #tpu.dimension_semantics<parallel>, #tpu.dimension_semantics<arbitrary>], iteration_bounds = array<i64: 1, 1, 1>, scalar_prefetch = 0 : i64, scratch_operands = 1 : i64, tpu.core_type = #tpu.core_type<tc>, window_params = [{transform_indices = @transform_0, window_bounds = array<i64: 16, 32>}, {transform_indices = @transform_1, window_bounds = array<i64: 128, 32>}, {transform_indices = @transform_2, window_bounds = array<i64: 1, 128>}, {transform_indices = @transform_3, window_bounds = array<i64: 16, 128>}]} {
    %c0_i32 = arith.constant 0 : i32
    %0 = arith.cmpi eq, %arg2, %c0_i32 : i32
    %1 = arith.extui %0 : i1 to i32
    %c0_i32_0 = arith.constant 0 : i32
    %2 = arith.cmpi ne, %1, %c0_i32_0 : i32
    scf.if %2 {
      %cst_10 = arith.constant 0.000000e+00 : f32
      %12 = vector.broadcast %cst_10 : f32 to vector<16x128xf32>
      %c0_11 = arith.constant 0 : index
      %c0_12 = arith.constant 0 : index
      %13 = vector.load %arg7[%c0_11, %c0_12] : memref<16x128xf32, #tpu.memory_space<vmem>>, vector<16x128xf32>
      tpu.vector_store %arg7[%c0_11, %c0_12], %12 {strides = array<i32>} : memref<16x128xf32, #tpu.memory_space<vmem>>, vector<16x128xf32>,
    } else {
    }
    %c0 = arith.constant 0 : index
    %c0_1 = arith.constant 0 : index
    %3 = vector.load %arg7[%c0, %c0_1] : memref<16x128xf32, #tpu.memory_space<vmem>>, vector<16x128xf32>
    %c0_2 = arith.constant 0 : index
    %c0_3 = arith.constant 0 : index
    %4 = vector.load %arg3[%c0_2, %c0_3] : memref<16x32xf32, #tpu.memory_space<vmem>>, vector<16x32xf32>
    %c0_4 = arith.constant 0 : index
    %c0_5 = arith.constant 0 : index
    %5 = vector.load %arg4[%c0_4, %c0_5] : memref<128x32xf32, #tpu.memory_space<vmem>>, vector<128x32xf32>
    %cst = arith.constant dense<0.000000e+00> : vector<16x128xf32>
    %6 = tpu.matmul %4, %5, %cst {dimension_numbers = #tpu.dot_dimension_numbers<[1], [1], [0], [0], [0, 0, 1, 0], [], []>} : vector<16x32xf32>, vector<128x32xf32>, vector<16x128xf32> -> vector<16x128xf32>
    %7 = arith.addf %3, %6 : vector<16x128xf32>
    %c0_6 = arith.constant 0 : index
    %c0_7 = arith.constant 0 : index
    %8 = vector.load %arg7[%c0_6, %c0_7] : memref<16x128xf32, #tpu.memory_space<vmem>>, vector<16x128xf32>
    tpu.vector_store %arg7[%c0_6, %c0_7], %7 {strides = array<i32>} : memref<16x128xf32, #tpu.memory_space<vmem>>, vector<16x128xf32>,
    %c0_i32_8 = arith.constant 0 : i32
    %9 = arith.cmpi eq, %arg2, %c0_i32_8 : i32
    %10 = arith.extui %9 : i1 to i32
    %c0_i32_9 = arith.constant 0 : i32
    %11 = arith.cmpi ne, %10, %c0_i32_9 : i32
    scf.if %11 {
      %c0_10 = arith.constant 0 : index
      %c0_11 = arith.constant 0 : index
      %12 = vector.load %arg7[%c0_10, %c0_11] : memref<16x128xf32, #tpu.memory_space<vmem>>, vector<16x128xf32>
      %c0_12 = arith.constant 0 : index
      %c0_13 = arith.constant 0 : index
      %13 = vector.load %arg5[%c0_12, %c0_13] : memref<1x128xf32, #tpu.memory_space<vmem>>, vector<1x128xf32>
      %14 = vector.broadcast %13 : vector<1x128xf32> to vector<16x128xf32>
      %15 = arith.addf %12, %14 : vector<16x128xf32>
      %c0_14 = arith.constant 0 : index
      %c0_15 = arith.constant 0 : index
      %16 = vector.load %arg6[%c0_14, %c0_15] : memref<16x128xf32, #tpu.memory_space<vmem>>, vector<16x128xf32>
      tpu.vector_store %arg6[%c0_14, %c0_15], %15 {strides = array<i32>} : memref<16x128xf32, #tpu.memory_space<vmem>>, vector<16x128xf32>,
    } else {
    }
    return
  }
  func.func @transform_0(%arg0: i32, %arg1: i32, %arg2: i32) -> (i32, i32) {
    %c0_i32 = arith.constant 0 : i32
    return %arg0, %arg2 : i32, i32
  }
  func.func @transform_1(%arg0: i32, %arg1: i32, %arg2: i32) -> (i32, i32) {
    %c0_i32 = arith.constant 0 : i32
    return %arg1, %arg2 : i32, i32
  }
  func.func @transform_2(%arg0: i32, %arg1: i32, %arg2: i32) -> (i32, i32) {
    %c0_i32 = arith.constant 0 : i32
    %c0_i32_0 = arith.constant 0 : i32
    return %c0_i32, %arg1 : i32, i32
  }
  func.func @transform_3(%arg0: i32, %arg1: i32, %arg2: i32) -> (i32, i32) {
    %c0_i32 = arith.constant 0 : i32
    return %arg0, %arg1 : i32, i32
  }
}

</mosaic_0001>

<bundles_post_ra>
// kernel: transformer_forward.12
= control target key start
LH: loop header
LB: loop body
LE: loop exit
PB: predicated region body
PF: predicated region fallthrough
CT: control target
= control target key end

     0   :  { %vm43_vm0 = vcmask 261120   ;;  %vm162_vm2 = vcmask 523264   ;;  %s561_s1 = inlined_call_operand.vmem [shape: f32[64,32], index: 1, kind: input, shape index: {}]   ;;  %s562_s0 = inlined_call_operand.vmem [shape: f32[16,32], index: 0, kind: input, shape index: {}]   ;;  %s563_s3 = inlined_call_operand.vmem [shape: f32[32,64], index: 3, kind: input, shape index: {}]   ;;  %s564_s2 = inlined_call_operand.vmem [shape: f32[1,64], index: 2, kind: input, shape index: {}]   ;;  %s565_s4 = inlined_call_operand.vmem [shape: f32[1,32], index: 4, kind: input, shape index: {}]   ;;  %s566_s5 = inlined_call_operand.vmem [shape: f32[1,32], index: 5, kind: input, shape index: {}]   ;;  %s567_s6 = inlined_call_operand.vmem [shape: f32[1,32], index: 6, kind: input, shape index: {}]   ;;  %s568_s7 = inlined_call_operand.vmem [shape: f32[16,32], index: 7, kind: output, shape index: {}]  }
   0x1   :  { %v28_v0 = vld [vmem:[%s561_s1] sm:$0xff]  ;;  %v29_v1 = vld [vmem:[%s561_s1 + $0x8] sm:$0xff]  ;;  %vm463_vm1 = vmpackc.low %vm43_vm0, %vm43_vm0 }
   0x2   :  { %v375_v3 = vpack.c.bf16 %v29_v1, %v28_v0  ;;  %v30_v4 = vld [vmem:[%s561_s1 + $0x10] sm:$0xff]  ;;  %v31_v5 = vld [vmem:[%s561_s1 + $0x18] sm:$0xff]  ;;  %v26_v7 = vld [vmem:[%s562_s0] sm:$0xff] }
   0x3   :  { %v381_v6 = vpack.c.bf16 %v31_v5, %v30_v4  ;;  %v151_v8 = vld [vmem:[%s563_s3] sm:$0xff]  ;;  %361 = vmatprep.mubr.msk.f32.mxu0 %vm43_vm0, %v26_v7  ;;  %v152_v9 = vld [vmem:[%s563_s3 + $0x8] sm:$0xff]  ;;  %vm489_vm3 = vmpackc.low %vm162_vm2, %vm162_vm2 }
   0x4   :  { %377 = vmatprep.subr.msk.bf16.mxu0 %vm463_vm1, %v375_v3  ;;  %v153_v11 = vld [vmem:[%s563_s3 + $0x10] sm:$0xff]  ;;  %v399_v12 = vpack.c.bf16 %v152_v9, %v151_v8  ;;  %v154_v13 = vld [vmem:[%s563_s3 + $0x18] sm:$0xff]  ;;  %v32_v14 = vld [vmem:[%s561_s1 + $0x20] sm:$0xff] }
   0x5   :  { %380 = vmatpush3.bf16.xpose.msk.msra.mxu0 %vm463_vm1, %v375_v3  ;;  %v33_v15 = vld [vmem:[%s561_s1 + $0x28] sm:$0xff]  ;;  %v405_v16 = vpack.c.bf16 %v154_v13, %v153_v11  ;;  %v34_v18 = vld [vmem:[%s561_s1 + $0x30] sm:$0xff]  ;;  %v35_v19 = vld [vmem:[%s561_s1 + $0x38] sm:$0xff] }
   0x6   :  { %383 = vmatprep.subr.msk.bf16.mxu0 %vm463_vm1, %v381_v6  ;;  %401 = vmatprep.subr.msk.bf16.mxu1 %vm489_vm3, %v399_v12  ;;  %v387_v17 = vpack.c.bf16 %v33_v15, %v32_v14  ;;  %v393_v20 = vpack.c.bf16 %v35_v19, %v34_v18  ;;  %v27_v21 = vld [vmem:[%s562_s0 + $0x8] sm:$0xff]  ;;  %v309_v22 = vld [vmem:[%s564_s2] ss:$0 sm:$0xff] }
   0x7   :  { %404 = vmatpush3.bf16.xpose.msk.msra.mxu1 %vm489_vm3, %v399_v12  ;;  %v320_v29 = vld [vmem:[%s565_s4] ss:$0 sm:$0xff] }
   0x8   :  { %407 = vmatprep.subr.msk.bf16.mxu1 %vm489_vm3, %v405_v16  ;;  %v327_v55 = vld [vmem:[%s566_s5] ss:$0 sm:$0xff] }
   0x9   :  { %v328_v57 = vld [vmem:[%s567_s6] ss:$0 sm:$0xff] }
   0xd   :  { %386 = vmatpush3.bf16.xpose.msk.msra.mxu0 %vm463_vm1, %v381_v6 }
   0xe   :  { %389 = vmatprep.subr.msk.bf16.mxu0 %vm463_vm1, %v387_v17 }
   0xf   :  { %410 = vmatpush3.bf16.xpose.msk.msra.mxu1 %vm489_vm3, %v405_v16 }
  0x15   :  { %392 = vmatpush3.bf16.xpose.msk.msra.mxu0 %vm463_vm1, %v387_v17 }
  0x16   :  { %395 = vmatprep.subr.msk.bf16.mxu0 %vm463_vm1, %v393_v20 }
  0x1d   :  { %398 = vmatpush3.bf16.xpose.msk.msra.mxu0 %vm463_vm1, %v393_v20 }
  0x24   :  { %362 = vmatmul.mubr.msk.f32.vlgmr.msra.gmra.mrb[0].mxu0 %vm43_vm0, %v27_v21 }
  0xf7   :  { %v363_v23 = vpop.f32.mrb[0].mxu0 }
  0xf8   :  { %v146_v24 = vadd.f32 %v363_v23, %v309_v22  ;;  %v140_v25 = vpop.f32.mrb[1].mxu0 }
  0xf9   :  { %v141_v26 = vadd.f32 %v309_v22, %v140_v25 }
  0xfa   :  { %v150_v28 = vmax.f32 %v146_v24, 0.0 }
  0xfb   :  { %v149_v27 = vmax.f32 %v141_v26, 0.0 }
  0xfd   :  { %372 = vmatprep.mubr.msk.f32.mxu1 %vm162_vm2, %v149_v27 }
  0xfe   :  { %373 = vmatmul.mubr.msk.f32.vlgmr.msra.gmra.mrb[0].mxu1 %vm162_vm2, %v150_v28 }
 0x1d1   :  { %v374_v30 = vpop.f32.mrb[0].mxu1 }
 0x1d2   :  { %v247_v31 = vpop.f32.mrb[1].mxu1  ;;  %v253_v32 = vadd.f32 %v374_v30, %v320_v29 }
 0x1d3   :  { %v248_v33 = vadd.f32 %v320_v29, %v247_v31 }
 0x1d4   :  { %v259_v36 = vadd.f32 %v253_v32, %v27_v21 }
 0x1d5   :  { %v258_v34 = vadd.f32 %v248_v33, %v26_v7 }
 0x1d6   :  { %v263_v37 = vsel %vm43_vm0, %v259_v36, 0.0 }
 0x1d7   :  { %v260_v35 = vsel %vm43_vm0, %v258_v34, 0.0 }
 0x1d8   :  { %261 = vadd.xlane.f32.xlu0 %v260_v35 }
 0x1dc   :  { %264 = vadd.xlane.f32.xlu0 %v263_v37 }
 0x265   :  { %v262_v38 = vpop.xlane.xlu0 %261 }
 0x266   :  { %v267_v39 = vmul.f32 0.03125, %v262_v38 }
 0x268   :  { %v269_v40 = vsub.f32 %v258_v34, %v267_v39 }
 0x269   :  { %v265_v41 = vpop.xlane.xlu0 %264 }
 0x26a   :  { %v268_v42 = vmul.f32 0.03125, %v265_v41  ;;  %v271_v43 = vmul.f32 %v269_v40, %v269_v40 }
 0x26c   :  { %v270_v44 = vsub.f32 %v259_v36, %v268_v42  ;;  %v273_v45 = vsel %vm43_vm0, %v271_v43, 0.0 }
 0x26d   :  { %274 = vadd.xlane.f32.xlu1 %v273_v45 }
 0x26e   :  { %v272_v46 = vmul.f32 %v270_v44, %v270_v44 }
 0x270   :  { %v276_v47 = vsel %vm43_vm0, %v272_v46, 0.0 }
 0x271   :  { %277 = vadd.xlane.f32.xlu1 %v276_v47 }
 0x2fa   :  { %v275_v48 = vpop.xlane.xlu1 %274 }
 0x2fb   :  { %v279_v49 = vmul.f32 0.03125, %v275_v48 }
 0x2fd   :  { %v281_v50 = vadd.f32 1e-05, %v279_v49 }
 0x2fe   :  { %v278_v51 = vpop.xlane.xlu1 %277 }
 0x2ff   :  { %411 = vrsqrt.f32 %v281_v50  ;;  %v280_v52 = vmul.f32 0.03125, %v278_v51 }
 0x301   :  { %v282_v53 = vadd.f32 1e-05, %v280_v52 }
 0x303   :  { %413 = vrsqrt.f32 %v282_v53 }
 0x309   :  { %v412_v54 = vpop.eup %411 }
 0x30a   :  { %v285_v56 = vmul.f32 %v412_v54, %v269_v40 }
 0x30c   :  { %v293_v58 = vmul.f32 %v327_v55, %v285_v56 }
 0x30d   :  { %v414_v59 = vpop.eup %413 }
 0x30e   :  { %v301_v60 = vadd.f32 %v328_v57, %v293_v58  ;;  %v286_v61 = vmul.f32 %v414_v59, %v270_v44 }
 0x310   :  { %303 = vst.msk [vmem:[%s568_s7] sm:$0xff] %vm43_vm0, %v301_v60  ;;  %v294_v62 = vmul.f32 %v327_v55, %v286_v61 }
 0x312   :  { %v302_v63 = vadd.f32 %v328_v57, %v294_v62 }
 0x314   :  { %304 = vst.msk [vmem:[%s568_s7 + $0x8] sm:$0xff] %vm43_vm0, %v302_v63 }

// kernel: transformer_forward.11
= control target key start
LH: loop header
LB: loop body
LE: loop exit
PB: predicated region body
PF: predicated region fallthrough
CT: control target
= control target key end

     0   :  { %s1628_s27 = smov 0   ;;  %s1835_s0 = inlined_call_operand.vmem [shape: f32[2,8,32], index: 0, kind: input, shape index: {}]   ;;  %s1836_s1 = inlined_call_operand.vmem [shape: f32[2,1,8], index: 1, kind: input, shape index: {}]   ;;  %s1837_s2 = inlined_call_operand.vmem [shape: f32[96,32], index: 2, kind: input, shape index: {}]   ;;  %s1838_s3 = inlined_call_operand.vmem [shape: f32[1,96], index: 3, kind: input, shape index: {}]   ;;  %s1839_s4 = inlined_call_operand.vmem [shape: f32[32,32], index: 4, kind: input, shape index: {}]   ;;  %s1840_s5 = inlined_call_operand.vmem [shape: f32[1,32], index: 5, kind: input, shape index: {}]   ;;  %s1841_s6 = inlined_call_operand.vmem [shape: f32[1,32], index: 6, kind: input, shape index: {}]   ;;  %s1842_s7 = inlined_call_operand.vmem [shape: f32[1,32], index: 7, kind: input, shape index: {}]   ;;  %s1843_s8 = inlined_call_operand.vmem [shape: f32[2,8,32], index: 8, kind: output, shape index: {}]  }
   0x1 LB: > { %s1327_s28 = sadd.s32 4294967295, %s1564_s27   ;;  %p1331_p0 = scmp.ge.s32.totalorder %s1564_s27, 1  ;;  %s1564_s27 = sphi %s1628_s27, %s18_s27  }
   0x2   : > { %p269_p1 = scmp.lt.s32.totalorder %s1564_s27, 3 }
   0x4   : > { %p270_p2 = pnand %p1331_p0, %p269_p1 }
   0x5   : > { %v316_v0 = vld [vmem:[%s1837_s2] sm:$0xff] (!%p270_p2)  ;;  %v317_v1 = vld [vmem:[%s1837_s2 + $0x8] sm:$0xff] (!%p270_p2)  ;;  %vm335_vm0 = vcmask (!%p270_p2), 261120   ;;  %v1566_v2 = vmov (!%p270_p2), 0.0|0.0   ;;  %vm1567_vm2 = vmmov (!%p270_p2), 0   ;;  %v1568_v5 = vmov (!%p270_p2), 0.0  }
   0x6   : > { %273 = sbr.rel (%p270_p2) target bundleno = 2755 (0xac3), region = 52  ;;  %1483 = vmatprep.subr.bf16.mxu0 (!%p270_p2), %v1566_v2  ;;  %v1484_v3 = vpack.c.bf16 (!%p270_p2), %v317_v1, %v316_v0  ;;  %vm1645_vm1 = vmpackc.low (!%p270_p2), %vm335_vm0, %vm335_vm0  ;;  %1429 = vmatprep.mubr.msk.f32.mxu0 (!%p270_p2), %vm1567_vm2, %v1568_v5  ;;  %v318_v6 = vld [vmem:[%s1837_s2 + $0x10] sm:$0xff] (!%p270_p2)  ;;  %v319_v7 = vld [vmem:[%s1837_s2 + $0x18] sm:$0xff] (!%p270_p2)  ;;  %p304_p3 = scmp.lt.s32.totalorder (!%p270_p2), %s1327_s28, 1  ;;  %vm449_vm3 = vcmask (!%p270_p2), 64512   ;;  %vm1133_vm4 = vcmask (!%p270_p2), 130048  }
   0x7   : > { %1432 = vmatprep.subr.mxu1 (!%p270_p2), %v1568_v5  ;;  %1434 = vmatprep.mubr.msk.f32.mxu1 (!%p270_p2), %vm1567_vm2, %v1568_v5  ;;  %v1488_v8 = vpack.c.bf16 (!%p270_p2), %v319_v7, %v318_v6  ;;  %v320_v9 = vld [vmem:[%s1837_s2 + $0x20] sm:$0xff] (!%p270_p2)  ;;  %v321_v10 = vld [vmem:[%s1837_s2 + $0x28] sm:$0xff] (!%p270_p2)  ;;  %v322_v12 = vld [vmem:[%s1837_s2 + $0x30] sm:$0xff] (!%p270_p2)  ;;  %s1569_s17 = smov (!%p270_p2), 64   ;;  %s1570_s18 = smov (!%p270_p2), 96   ;;  %vm1135_vm5 = vcmask (!%p270_p2), 195584  }
   0x8   : > { %1486 = vmatpush3.bf16.xpose.msk.msra.mxu0 (!%p270_p2), %vm1645_vm1, %v1484_v3  ;;  %v1492_v11 = vpack.c.bf16 (!%p270_p2), %v321_v10, %v320_v9  ;;  %v323_v13 = vld [vmem:[%s1837_s2 + $0x38] sm:$0xff] (!%p270_p2)  ;;  %v324_v15 = vld [vmem:[%s1837_s2 + $0x40] sm:$0xff] (!%p270_p2)  ;;  %v325_v16 = vld [vmem:[%s1837_s2 + $0x48] sm:$0xff] (!%p270_p2)  ;;  %s1571_s19 = smov (!%p270_p2), 88   ;;  %s1572_s20 = smov (!%p270_p2), 120  }
   0x9   : > { %1487 = vmatprep.subr.bf16.mxu0 (!%p270_p2), %v1566_v2  ;;  %v1496_v14 = vpack.c.bf16 (!%p270_p2), %v323_v13, %v322_v12  ;;  %v1500_v17 = vpack.c.bf16 (!%p270_p2), %v325_v16, %v324_v15  ;;  %v326_v18 = vld [vmem:[%s1837_s2 + $0x50] sm:$0xff] (!%p270_p2)  ;;  %v327_v19 = vld [vmem:[%s1837_s2 + $0x58] sm:$0xff] (!%p270_p2)  ;;  %v1334_v22 = vld [vmem:[%s1838_s3] ss:$0 sm:$0xff] (!%p270_p2)  ;;  %s1573_s24 = smov (!%p270_p2), 56   ;;  %s1574_s25 = smov (!%p270_p2), 112  }
   0xa   : > { %v1504_v20 = vpack.c.bf16 (!%p270_p2), %v327_v19, %v326_v18  ;;  %s1575_s26 = smov (!%p270_p2), 80   ;;  %s1576_s29 = smov (!%p270_p2), 48  }
   0xb   : > { %s1577_s30 = smov (!%p270_p2), 72   ;;  %s1578_s9 = smov (!%p270_p2), 104  }
   0xc   : > { %s1579_s10 = smov (!%p270_p2), 40   ;;  %s1580_s12 = smov (!%p270_p2), 8  }
   0xd   : > { %s1847_s28 = smov (!%p304_p3, %s1327_s28), 1  ;;  %s1581_s13 = smov 16  }
   0xe   : > { %s1332_s11 = sshll.u32 %s1847_s28, 3  ;;  %s310_s23 = scalar_lea.vmem %s1836_s1, %s1847_s28 }
   0xf   : > { %s307_s14 = scalar_lea.vmem %s1835_s0, %s1332_s11  ;;  %v1737_v29 = vld [vmem:[%s310_s23] ss:$0 sm:$0xff]  ;;  %s1582_s22 = smov 24  }
  0x10   : > { %1490 = vmatpush3.bf16.xpose.msk.msra.mxu0 %vm1645_vm1, %v1488_v8  ;;  %v1713_v21 = vld [vmem:[%s307_s14] sm:$0xff] }
  0x11   : > { %1491 = vmatprep.subr.bf16.mxu0 %v1566_v2 }
  0x18   : > { %1494 = vmatpush3.bf16.xpose.msk.msra.mxu0 %vm1645_vm1, %v1492_v11 }
  0x19   : > { %1495 = vmatprep.subr.bf16.mxu0 %v1566_v2 }
  0x20   : > { %1498 = vmatpush3.bf16.xpose.msk.msra.mxu0 %vm1645_vm1, %v1496_v14 }
  0x21   : > { %1499 = vmatprep.subr.bf16.mxu0 %v1566_v2 }
  0x28   : > { %1502 = vmatpush3.bf16.xpose.msk.msra.mxu0 %vm1645_vm1, %v1500_v17 }
  0x29   : > { %1503 = vmatprep.subr.bf16.mxu0 %v1566_v2 }
  0x30   : > { %1506 = vmatpush3.bf16.xpose.msk.msra.mxu0 %vm1645_vm1, %v1504_v20 }
  0x37   : > { %1430 = vmatmul.mubr.msk.f32.vlgmr.msra.gmra.mrb[0].mxu0 %vm335_vm0, %v1713_v21 }
 0x10a   : > { %v441_v23 = vpop.f32.mrb[0].mxu0 }
 0x10b   : > { %v1720_v24 = vadd.f32 %v1334_v22, %v441_v23  ;;  %v1431_v25 = vpop.f32.mrb[1].mxu0 }
 0x10d   : > { %541 = vrot.lane.b32.xlu1 %v1720_v24, %s1569_s17  ;;  %447 = vrot.lane.b32.xlu0 %v1720_v24, %s1570_s18 }
 0x111   : > { %621 = vrot.lane.b32.xlu1 %v1720_v24, %s1571_s19 }
 0x115   : > { %619 = vrot.lane.b32.xlu1 %v1720_v24, %s1572_s20 }
 0x17f   : > { %v448_v26 = vpop.permute.xlu0 %447  ;;  %v542_v27 = vpop.permute.xlu1 %541 }
 0x180   : > { %1433 = vmatpush3.xpose.msk.msra.mxu1 %vm449_vm3, %v448_v26 }
 0x181   : > { %1437 = vmatprep.subr.mxu1 %v1568_v5 }
 0x183   : > { %1435 = vmatmul.mubr.msk.f32.vlgmr.msra.gmra.mrb[0].mxu1 %vm449_vm3, %v1720_v24  ;;  %v622_v37 = vpop.permute.xlu1 %621 }
 0x184   : > { %1438 = vmatpush3.msra.mxu1 %v542_v27  ;;  %1439 = vmatprep.mubr.msk.f32.mxu1 %vm1567_vm2, %v1568_v5 }
 0x185   : > { %1442 = vmatprep.subr.mxu1 %v1568_v5 }
 0x187   : > { %v620_v39 = vpop.permute.xlu1 %619 }
 0x256   : > { %v520_v28 = vpop.f32.mrb[0].mxu1 }
 0x257   : > { %v524_v30 = vmul.f32 0.35355338, %v520_v28  ;;  %v1436_v31 = vpop.f32.mrb[1].mxu1 }
 0x259   : > { %v531_v32 = vadd.f32 %v1737_v29, %v524_v30  ;;  %v1138_v30 = vld [vmem:[%s1839_s4 + $0x8] sm:$0xff] }
 0x25b   : > { %v532_v33 = vsel %vm449_vm3, %v531_v32, -inf }
 0x25c   : > { %533 = vmax.xlane.f32.xlu0 %v532_v33  ;;  %v1140_v33 = vld [vmem:[%s1839_s4 + $0x18] sm:$0xff] }
 0x272   : > { %708 = vrot.lane.b32.xlu0 %v1720_v24, %s1573_s24 }
 0x276   : > { %786 = vrot.lane.b32.xlu0 %v1720_v24, %s1574_s25 }
 0x2e9   : > { %v534_v34 = vpop.xlane.xlu0 %533 }
 0x2ea   : > { %v535_v35 = vsub.f32 %v531_v32, %v534_v34  ;;  %v1139_v32 = vld [vmem:[%s1839_s4 + $0x10] sm:$0xff] }
 0x2eb   : > { %v1512_v34 = vpack.c.bf16 %v1140_v33, %v1139_v32 }
 0x2ec   : > { %v536_v36 = vmul.f32 1.442695, %v535_v35 }
 0x2ed   : > { %v709_v40 = vpop.permute.xlu0 %708 }
 0x2ee   : > { %1540 = vpow2.f32 %v536_v36 }
 0x2f1   : > { %v787_v53 = vpop.permute.xlu0 %786 }
 0x2f8   : > { %v1743_v38 = vpop.eup %1540 }
 0x2f9   : > { %1440 = vmatmul.mubr.msk.f32.vlgmr.msra.gmra.mrb[2].mxu1 %vm449_vm3, %v1743_v38 }
 0x2fa   : > { %1443 = vmatpush3.xpose.msk.msra.mxu1 %vm449_vm3, %v622_v37  ;;  %1444 = vmatprep.mubr.msk.f32.mxu1 %vm1567_vm2, %v1568_v5 }
 0x2fb   : > { %1447 = vmatprep.subr.mxu1 %v1568_v5 }
 0x2fd   : > { %1445 = vmatmul.mubr.msk.f32.vlgmr.msra.gmra.mrb[4].mxu1 %vm449_vm3, %v620_v39 }
 0x2fe   : > { %1448 = vmatpush3.msra.mxu1 %v709_v40  ;;  %1449 = vmatprep.mubr.msk.f32.mxu1 %vm1567_vm2, %v1568_v5 }
 0x2ff   : > { %1452 = vmatprep.subr.mxu1 %v1568_v5 }
 0x3cc   : > { %v1755_v41 = vpop.f32.mrb[2].mxu1 }
 0x3cd   : > { %v1441_v42 = vpop.f32.mrb[3].mxu1 }
 0x3d0   : > { %v693_v43 = vpop.f32.mrb[4].mxu1 }
 0x3d1   : > { %v697_v44 = vmul.f32 0.35355338, %v693_v43  ;;  %v1446_v45 = vpop.f32.mrb[5].mxu1 }
 0x3d3   : > { %v698_v46 = vadd.f32 %v1737_v29, %v697_v44 }
 0x3d5   : > { %v699_v47 = vsel %vm449_vm3, %v698_v46, -inf }
 0x3d6   : > { %700 = vmax.xlane.f32.xlu1 %v699_v47 }
 0x3e7   : > { %788 = vrot.lane.b32.xlu1 %v1720_v24, %s1575_s26 }
 0x3eb   : > { %875 = vrot.lane.b32.xlu1 %v1720_v24, %s1576_s29 }
 0x3ef   : > { %955 = vrot.lane.b32.xlu1 %v1720_v24, %s1577_s30 }
 0x3f3   : > { %953 = vrot.lane.b32.xlu1 %v1720_v24, %s1578_s9 }
 0x463   : > { %v701_v48 = vpop.xlane.xlu1 %700 }
 0x464   : > { %v702_v49 = vsub.f32 %v698_v46, %v701_v48  ;;  %v1361_v48 = vld [vmem:[%s1840_s5] ss:$0 sm:$0xff] }
 0x466   : > { %v703_v50 = vmul.f32 1.442695, %v702_v49 }
 0x467   : > { %v789_v51 = vpop.permute.xlu1 %788 }
 0x468   : > { %1542 = vpow2.f32 %v703_v50 }
 0x46b   : > { %v876_v54 = vpop.permute.xlu1 %875 }
 0x46f   : > { %v956_v1 = vpop.permute.xlu1 %955 }
 0x472   : > { %v1543_v52 = vpop.eup %1542 }
 0x473   : > { %1450 = vmatmul.mubr.msk.f32.vlgmr.msra.gmra.mrb[6].mxu1 %vm449_vm3, %v1543_v52  ;;  %v954_v7 = vpop.permute.xlu1 %953  ;;  %v705_v16 = vsel %vm449_vm3, %v1543_v52, 0.0 }
 0x474   : > { %1453 = vmatpush3.xpose.msk.msra.mxu1 %vm449_vm3, %v789_v51  ;;  %1454 = vmatprep.mubr.msk.f32.mxu1 %vm1567_vm2, %v1568_v5 }
 0x475   : > { %1457 = vmatprep.subr.mxu1 %v1568_v5 }
 0x477   : > { %1455 = vmatmul.mubr.msk.f32.vlgmr.msra.gmra.mrb[8].mxu1 %vm449_vm3, %v787_v53 }
 0x478   : > { %1458 = vmatpush3.msra.mxu1 %v876_v54  ;;  %1459 = vmatprep.mubr.msk.f32.mxu1 %vm1567_vm2, %v1568_v5 }
 0x479   : > { %1462 = vmatprep.subr.mxu1 %v1568_v5 }
 0x546   : > { %v780_v55 = vpop.f32.mrb[6].mxu1 }
 0x547   : > { %v1451_v56 = vpop.f32.mrb[7].mxu1 }
 0x54a   : > { %v860_v57 = vpop.f32.mrb[8].mxu1 }
 0x54b   : > { %v864_v58 = vmul.f32 0.35355338, %v860_v57  ;;  %v1456_v59 = vpop.f32.mrb[9].mxu1 }
 0x54d   : > { %v865_v60 = vadd.f32 %v1737_v29, %v864_v58 }
 0x54f   : > { %v866_v61 = vsel %vm449_vm3, %v865_v60, -inf }
 0x550   : > { %867 = vmax.xlane.f32.xlu0 %v866_v61 }
 0x566   : > { %1042 = vrot.lane.b32.xlu0 %v1720_v24, %s1579_s10  ;;  %v538_v24 = vsel %vm449_vm3, %v1743_v38, 0.0 }
 0x5dd   : > { %v868_v62 = vpop.xlane.xlu0 %867 }
 0x5de   : > { %v869_v63 = vsub.f32 %v865_v60, %v868_v62 }
 0x5e0   : > { %v870_v0 = vmul.f32 1.442695, %v869_v63  ;;  %v1368_v63 = vld [vmem:[%s1842_s7] ss:$0 sm:$0xff] }
 0x5e1   : > { %v1043_v8 = vpop.permute.xlu0 %1042 }
 0x5e2   : > { %1544 = vpow2.f32 %v870_v0 }
 0x5ec   : > { %v1545_v3 = vpop.eup %1544 }
 0x5ed   : > { %1460 = vmatmul.mubr.msk.f32.vlgmr.msra.gmra.mrb[10].mxu1 %vm449_vm3, %v1545_v3  ;;  %v872_v6 = vsel %vm449_vm3, %v1545_v3, 0.0 }
 0x5ee   : > { %1463 = vmatpush3.xpose.msk.msra.mxu1 %vm449_vm3, %v956_v1  ;;  %873 = vadd.xlane.f32.xlu0 %v872_v6 }
 0x5ef   : > { %1464 = vmatprep.mubr.msk.f32.mxu1 %vm1567_vm2, %v1568_v5  ;;  %1467 = vmatprep.subr.mxu1 %v1568_v5 }
 0x5f1   : > { %1465 = vmatmul.mubr.msk.f32.vlgmr.msra.gmra.mrb[12].mxu1 %vm449_vm3, %v954_v7 }
 0x5f2   : > { %1468 = vmatpush3.msra.mxu1 %v1043_v8  ;;  %1469 = vmatprep.mubr.msk.f32.mxu1 %vm1567_vm2, %v1568_v5 }
 0x5f3   : > { %1507 = vmatprep.subr.bf16.mxu1 %v1566_v2 }
 0x67b   : > { %v874_v25 = vpop.xlane.xlu0 %873 }
 0x6c0   : > { %v947_v9 = vpop.f32.mrb[10].mxu1 }
 0x6c1   : > { %v1461_v10 = vpop.f32.mrb[11].mxu1 }
 0x6c4   : > { %v1027_v11 = vpop.f32.mrb[12].mxu1 }
 0x6c5   : > { %v1031_v12 = vmul.f32 0.35355338, %v1027_v11  ;;  %v1466_v13 = vpop.f32.mrb[13].mxu1 }
 0x6c7   : > { %v1032_v14 = vadd.f32 %v1737_v29, %v1031_v12 }
 0x6c9   : > { %v1033_v15 = vsel %vm449_vm3, %v1032_v14, -inf }
 0x6ca   : > { %1034 = vmax.xlane.f32.xlu1 %v1033_v15 }
 0x6ce   : > { %706 = vadd.xlane.f32.xlu1 %v705_v16 }
 0x757   : > { %v1035_v17 = vpop.xlane.xlu1 %1034 }
 0x758   : > { %v1036_v18 = vsub.f32 %v1032_v14, %v1035_v17 }
 0x75a   : > { %v1037_v19 = vmul.f32 1.442695, %v1036_v18 }
 0x75b   : > { %v707_v23 = vpop.xlane.xlu1 %706 }
 0x75c   : > { %1546 = vpow2.f32 %v1037_v19 }
 0x75d   : > { %1548 = vrcp.f32 %v707_v23 }
 0x75e   : > { %1550 = vrcp.f32 %v874_v25 }
 0x766   : > { %v1547_v20 = vpop.eup %1546 }
 0x767   : > { %1470 = vmatmul.mubr.msk.f32.vlgmr.msra.gmra.mrb[14].mxu1 %vm449_vm3, %v1547_v20  ;;  %v1039_v22 = vsel %vm449_vm3, %v1547_v20, 0.0  ;;  %v1549_v26 = vpop.eup %1548 }
 0x768   : > { %1040 = vadd.xlane.f32.xlu1 %v1039_v22  ;;  %1480 = vmatprep.mubr.msk.f32.mxu1 %vm1567_vm2, %v1568_v5  ;;  %v785_v27 = vmul.f32 %v1549_v26, %v780_v55  ;;  %v1551_v28 = vpop.eup %1550  ;;  %v1137_v5 = vld [vmem:[%s1839_s4] sm:$0xff] }
 0x769   : > { %v952_v29 = vmul.f32 %v1551_v28, %v947_v9  ;;  %v1508_v31 = vpack.c.bf16 %v1138_v30, %v1137_v5 }
 0x76b   : > { %1510 = vmatpush3.bf16.xpose.msk.msra.mxu1 %vm1645_vm1, %v1508_v31 }
 0x76c   : > { %539 = vadd.xlane.f32.xlu1 %v538_v24  ;;  %1511 = vmatprep.subr.bf16.mxu1 %v1566_v2 }
 0x773   : > { %1514 = vmatpush3.bf16.xpose.msk.msra.mxu1 %vm1645_vm1, %v1512_v34 }
 0x77d   : > { %1121 = vrot.lane.b32.xlu1 %v785_v27, %s1580_s12  ;;  %s314_s12 = scalar_lea.vmem %s1843_s8, %s1332_s11 }
 0x781   : > { %1125 = vrot.lane.b32.xlu1 %v952_v29, %s1581_s13 }
 0x7f5   : > { %v1041_v35 = vpop.xlane.xlu1 %1040 }
 0x7f6   : > { %1552 = vrcp.f32 %v1041_v35 }
 0x7f9   : > { %v540_v2 = vpop.xlane.xlu1 %539 }
 0x7fa   : > { %1554 = vrcp.f32 %v540_v2 }
 0x7fd   : > { %v1122_v43 = vpop.permute.xlu1 %1121 }
 0x800   : > { %v1553_v36 = vpop.eup %1552 }
 0x801   : > { %v1126_v4 = vpop.permute.xlu1 %1125 }
 0x804   : > { %v1555_v40 = vpop.eup %1554 }
 0x805   : > { %v618_v42 = vmul.f32 %v1555_v40, %v1755_v41 }
 0x807   : > { %v1132_v44 = vsel %vm449_vm3, %v618_v42, %v1122_v43 }
 0x808   : > { %v1134_v45 = vsel %vm1133_vm4, %v1132_v44, %v1126_v4 }
 0x83a   : > { %v1114_v37 = vpop.f32.mrb[14].mxu1 }
 0x83b   : > { %v1119_v38 = vmul.f32 %v1553_v36, %v1114_v37  ;;  %v1471_v39 = vpop.f32.mrb[15].mxu1 }
 0x83d   : > { %1129 = vrot.lane.b32.xlu0 %v1119_v38, %s1582_s22 }
 0x8af   : > { %v1130_v46 = vpop.permute.xlu0 %1129 }
 0x8b0   : > { %v1136_v47 = vsel %vm1135_vm5, %v1134_v45, %v1130_v46 }
 0x8b1   : > { %1481 = vmatmul.mubr.msk.f32.vlgmr.msra.gmra.mrb[16].mxu1 %vm335_vm0, %v1136_v47 }
 0x984   : > { %v1229_v49 = vpop.f32.mrb[16].mxu1 }
 0x985   : > { %v1230_v50 = vadd.f32 %v1361_v48, %v1229_v49  ;;  %v1482_v51 = vpop.f32.mrb[17].mxu1 }
 0x987   : > { %v1235_v41 = vadd.f32 %v1230_v50, %v1713_v21  ;;  %v1367_v21 = vld [vmem:[%s1841_s6] ss:$0 sm:$0xff] }
 0x989   : > { %v1236_v52 = vsel %vm335_vm0, %v1235_v41, 0.0 }
 0x98a   : > { %1237 = vadd.xlane.f32.xlu1 %v1236_v52 }
 0xa17   : > { %v1238_v53 = vpop.xlane.xlu1 %1237 }
 0xa18   : > { %v1240_v54 = vmul.f32 0.03125, %v1238_v53 }
 0xa1a   : > { %v1241_v55 = vsub.f32 %v1235_v41, %v1240_v54 }
 0xa1c   : > { %v1242_v56 = vmul.f32 %v1241_v55, %v1241_v55 }
 0xa1e   : > { %v1243_v57 = vsel %vm335_vm0, %v1242_v56, 0.0 }
 0xa1f   : > { %1244 = vadd.xlane.f32.xlu0 %v1243_v57 }
 0xaac   : > { %v1245_v58 = vpop.xlane.xlu0 %1244 }
 0xaad   : > { %v1246_v59 = vmul.f32 0.03125, %v1245_v58 }
 0xaaf   : > { %v1247_v60 = vadd.f32 1e-05, %v1246_v59 }
 0xab1   : > { %1556 = vrsqrt.f32 %v1247_v60 }
 0xabb   : > { %v1557_v61 = vpop.eup %1556 }
 0xabc   : > { %v1249_v62 = vmul.f32 %v1557_v61, %v1241_v55 }
 0xabe   : > { %v1256_v0 = vmul.f32 %v1367_v21, %v1249_v62 }
 0xac0   : > { %v1263_v1 = vadd.f32 %v1368_v63, %v1256_v0 }
 0xac2   : > { %1264 = vst.msk [vmem:[%s314_s12] sm:$0xff] %vm335_vm0, %v1263_v1 }
 0xac3 PF: > { %s18_s27 = sadd.s32 1, %s1564_s27  }
 0xac4   : > { %p15_p4 = scmp.ge.s32.totalorder %s18_s27, 4  }
 0xac6   :  { %17 = sbr.rel (!%p15_p4) target bundleno = 1 (0x1), region = 85 }

// kernel: transformer_forward.15
= control target key start
LH: loop header
LB: loop body
LE: loop exit
PB: predicated region body
PF: predicated region fallthrough
CT: control target
= control target key end

     0   :  { %s1635_s27 = smov 0   ;;  %s1843_s0 = inlined_call_operand.vmem [shape: f32[2,8,32], index: 0, kind: input, shape index: {}]   ;;  %s1844_s1 = inlined_call_operand.vmem [shape: f32[2,1,8], index: 1, kind: input, shape index: {}]   ;;  %s1845_s2 = inlined_call_operand.vmem [shape: f32[96,32], index: 2, kind: input, shape index: {}]   ;;  %s1846_s3 = inlined_call_operand.vmem [shape: f32[1,96], index: 3, kind: input, shape index: {}]   ;;  %s1847_s4 = inlined_call_operand.vmem [shape: f32[32,32], index: 4, kind: input, shape index: {}]   ;;  %s1848_s5 = inlined_call_operand.vmem [shape: f32[1,32], index: 5, kind: input, shape index: {}]   ;;  %s1849_s6 = inlined_call_operand.vmem [shape: f32[1,32], index: 6, kind: input, shape index: {}]   ;;  %s1850_s7 = inlined_call_operand.vmem [shape: f32[1,32], index: 7, kind: input, shape index: {}]   ;;  %s1851_s8 = inlined_call_operand.vmem [shape: f32[2,8,32], index: 8, kind: output, shape index: {}]  }
   0x1 LB: > { %s1334_s28 = sadd.s32 4294967295, %s1571_s27   ;;  %p1338_p0 = scmp.ge.s32.totalorder %s1571_s27, 1  ;;  %s1571_s27 = sphi %s1635_s27, %s18_s27  }
   0x2   : > { %p269_p1 = scmp.lt.s32.totalorder %s1571_s27, 3 }
   0x4   : > { %p270_p2 = pnand %p1338_p0, %p269_p1 }
   0x5   : > { %v316_v0 = vld [vmem:[%s1845_s2] sm:$0xff] (!%p270_p2)  ;;  %v317_v1 = vld [vmem:[%s1845_s2 + $0x8] sm:$0xff] (!%p270_p2)  ;;  %vm335_vm0 = vcmask (!%p270_p2), 261120   ;;  %v1573_v2 = vmov (!%p270_p2), 0.0|0.0   ;;  %vm1574_vm2 = vmmov (!%p270_p2), 0   ;;  %v1575_v5 = vmov (!%p270_p2), 0.0  }
   0x6   : > { %273 = sbr.rel (%p270_p2) target bundleno = 2755 (0xac3), region = 52  ;;  %1490 = vmatprep.subr.bf16.mxu0 (!%p270_p2), %v1573_v2  ;;  %v1491_v3 = vpack.c.bf16 (!%p270_p2), %v317_v1, %v316_v0  ;;  %vm1652_vm1 = vmpackc.low (!%p270_p2), %vm335_vm0, %vm335_vm0  ;;  %1436 = vmatprep.mubr.msk.f32.mxu0 (!%p270_p2), %vm1574_vm2, %v1575_v5  ;;  %v318_v6 = vld [vmem:[%s1845_s2 + $0x10] sm:$0xff] (!%p270_p2)  ;;  %v319_v7 = vld [vmem:[%s1845_s2 + $0x18] sm:$0xff] (!%p270_p2)  ;;  %p304_p3 = scmp.lt.s32.totalorder (!%p270_p2), %s1334_s28, 1  ;;  %vm462_vm3 = vcmask (!%p270_p2), 64512   ;;  %v446_v28 = vlaneseq (!%p270_p2)  ;;  %vm1140_vm5 = vcmask (!%p270_p2), 130048  }
   0x7   : > { %1439 = vmatprep.subr.mxu1 (!%p270_p2), %v1575_v5  ;;  %1441 = vmatprep.mubr.msk.f32.mxu1 (!%p270_p2), %vm1574_vm2, %v1575_v5  ;;  %v1495_v8 = vpack.c.bf16 (!%p270_p2), %v319_v7, %v318_v6  ;;  %v320_v9 = vld [vmem:[%s1845_s2 + $0x20] sm:$0xff] (!%p270_p2)  ;;  %v321_v10 = vld [vmem:[%s1845_s2 + $0x28] sm:$0xff] (!%p270_p2)  ;;  %v322_v12 = vld [vmem:[%s1845_s2 + $0x30] sm:$0xff] (!%p270_p2)  ;;  %s1576_s17 = smov (!%p270_p2), 64   ;;  %s1577_s18 = smov (!%p270_p2), 96   ;;  %vm1142_vm6 = vcmask (!%p270_p2), 195584  }
   0x8   : > { %1493 = vmatpush3.bf16.xpose.msk.msra.mxu0 (!%p270_p2), %vm1652_vm1, %v1491_v3  ;;  %v1499_v11 = vpack.c.bf16 (!%p270_p2), %v321_v10, %v320_v9  ;;  %v323_v13 = vld [vmem:[%s1845_s2 + $0x38] sm:$0xff] (!%p270_p2)  ;;  %v324_v15 = vld [vmem:[%s1845_s2 + $0x40] sm:$0xff] (!%p270_p2)  ;;  %v325_v16 = vld [vmem:[%s1845_s2 + $0x48] sm:$0xff] (!%p270_p2)  ;;  %s1578_s19 = smov (!%p270_p2), 88   ;;  %s1579_s20 = smov (!%p270_p2), 120   ;;  %v447_v29 = vshrl.u32 (!%p270_p2), %v446_v28, 7 }
   0x9   : > { %1494 = vmatprep.subr.bf16.mxu0 (!%p270_p2), %v1573_v2  ;;  %v1503_v14 = vpack.c.bf16 (!%p270_p2), %v323_v13, %v322_v12  ;;  %v1507_v17 = vpack.c.bf16 (!%p270_p2), %v325_v16, %v324_v15  ;;  %v326_v18 = vld [vmem:[%s1845_s2 + $0x50] sm:$0xff] (!%p270_p2)  ;;  %v327_v19 = vld [vmem:[%s1845_s2 + $0x58] sm:$0xff] (!%p270_p2)  ;;  %v1341_v22 = vld [vmem:[%s1846_s3] ss:$0 sm:$0xff] (!%p270_p2)  ;;  %v449_v30 = vand.u32 (!%p270_p2), 127, %v446_v28  ;;  %s1580_s24 = smov (!%p270_p2), 56  }
   0xa   : > { %v1511_v20 = vpack.c.bf16 (!%p270_p2), %v327_v19, %v326_v18  ;;  %s1581_s25 = smov (!%p270_p2), 112   ;;  %s1582_s26 = smov (!%p270_p2), 80  }
   0xb   : > { %vm450_vm4 = vcmp.gt.s32.totalorder (!%p270_p2), %v449_v30, %v447_v29  ;;  %s1583_s29 = smov (!%p270_p2), 48   ;;  %s1584_s30 = smov (!%p270_p2), 72  }
   0xc   : > { %v451_v32 = vsel (!%p270_p2), %vm450_vm4, -1e+09, %v1575_v5  ;;  %s1585_s9 = smov (!%p270_p2), 104   ;;  %s1586_s10 = smov (!%p270_p2), 40  }
   0xd   : > { %s1855_s28 = smov (!%p304_p3, %s1334_s28), 1  ;;  %s1587_s12 = smov 8  }
   0xe   : > { %s1339_s11 = sshll.u32 %s1855_s28, 3  ;;  %s310_s23 = scalar_lea.vmem %s1844_s1, %s1855_s28 }
   0xf   : > { %s307_s14 = scalar_lea.vmem %s1843_s0, %s1339_s11  ;;  %v1355_v31 = vld [vmem:[%s310_s23] ss:$0 sm:$0xff]  ;;  %s1588_s13 = smov 16  }
  0x10   : > { %1497 = vmatpush3.bf16.xpose.msk.msra.mxu0 %vm1652_vm1, %v1495_v8  ;;  %v1720_v21 = vld [vmem:[%s307_s14] sm:$0xff]  ;;  %v1745_v33 = vadd.f32 %v1355_v31, %v451_v32  ;;  %s1589_s22 = smov 24  }
  0x11   : > { %1498 = vmatprep.subr.bf16.mxu0 %v1573_v2 }
  0x18   : > { %1501 = vmatpush3.bf16.xpose.msk.msra.mxu0 %vm1652_vm1, %v1499_v11 }
  0x19   : > { %1502 = vmatprep.subr.bf16.mxu0 %v1573_v2 }
  0x20   : > { %1505 = vmatpush3.bf16.xpose.msk.msra.mxu0 %vm1652_vm1, %v1503_v14 }
  0x21   : > { %1506 = vmatprep.subr.bf16.mxu0 %v1573_v2 }
  0x28   : > { %1509 = vmatpush3.bf16.xpose.msk.msra.mxu0 %vm1652_vm1, %v1507_v17 }
  0x29   : > { %1510 = vmatprep.subr.bf16.mxu0 %v1573_v2 }
  0x30   : > { %1513 = vmatpush3.bf16.xpose.msk.msra.mxu0 %vm1652_vm1, %v1511_v20 }
  0x37   : > { %1437 = vmatmul.mubr.msk.f32.vlgmr.msra.gmra.mrb[0].mxu0 %vm335_vm0, %v1720_v21 }
 0x10a   : > { %v441_v23 = vpop.f32.mrb[0].mxu0 }
 0x10b   : > { %v1727_v24 = vadd.f32 %v1341_v22, %v441_v23  ;;  %v1438_v25 = vpop.f32.mrb[1].mxu0 }
 0x10d   : > { %548 = vrot.lane.b32.xlu1 %v1727_v24, %s1576_s17  ;;  %460 = vrot.lane.b32.xlu0 %v1727_v24, %s1577_s18 }
 0x111   : > { %628 = vrot.lane.b32.xlu1 %v1727_v24, %s1578_s19 }
 0x115   : > { %626 = vrot.lane.b32.xlu1 %v1727_v24, %s1579_s20 }
 0x17f   : > { %v461_v26 = vpop.permute.xlu0 %460  ;;  %v549_v27 = vpop.permute.xlu1 %548 }
 0x180   : > { %1440 = vmatpush3.xpose.msk.msra.mxu1 %vm462_vm3, %v461_v26 }
 0x181   : > { %1444 = vmatprep.subr.mxu1 %v1575_v5 }
 0x183   : > { %1442 = vmatmul.mubr.msk.f32.vlgmr.msra.gmra.mrb[0].mxu1 %vm462_vm3, %v1727_v24  ;;  %v629_v42 = vpop.permute.xlu1 %628 }
 0x184   : > { %1445 = vmatpush3.msra.mxu1 %v549_v27  ;;  %1446 = vmatprep.mubr.msk.f32.mxu1 %vm1574_vm2, %v1575_v5 }
 0x185   : > { %1449 = vmatprep.subr.mxu1 %v1575_v5 }
 0x187   : > { %v627_v44 = vpop.permute.xlu1 %626 }
 0x256   : > { %v533_v34 = vpop.f32.mrb[0].mxu1 }
 0x257   : > { %v537_v35 = vmul.f32 0.35355338, %v533_v34  ;;  %v1443_v36 = vpop.f32.mrb[1].mxu1 }
 0x259   : > { %v538_v37 = vadd.f32 %v537_v35, %v1745_v33  ;;  %v1145_v35 = vld [vmem:[%s1847_s4 + $0x8] sm:$0xff] }
 0x25b   : > { %v539_v38 = vsel %vm462_vm3, %v538_v37, -inf }
 0x25c   : > { %540 = vmax.xlane.f32.xlu0 %v539_v38  ;;  %v1147_v38 = vld [vmem:[%s1847_s4 + $0x18] sm:$0xff] }
 0x272   : > { %715 = vrot.lane.b32.xlu0 %v1727_v24, %s1580_s24 }
 0x276   : > { %793 = vrot.lane.b32.xlu0 %v1727_v24, %s1581_s25 }
 0x2e9   : > { %v541_v39 = vpop.xlane.xlu0 %540 }
 0x2ea   : > { %v542_v40 = vsub.f32 %v538_v37, %v541_v39  ;;  %v1146_v37 = vld [vmem:[%s1847_s4 + $0x10] sm:$0xff] }
 0x2eb   : > { %v1519_v39 = vpack.c.bf16 %v1147_v38, %v1146_v37 }
 0x2ec   : > { %v543_v41 = vmul.f32 1.442695, %v542_v40 }
 0x2ed   : > { %v716_v45 = vpop.permute.xlu0 %715 }
 0x2ee   : > { %1547 = vpow2.f32 %v543_v41 }
 0x2f1   : > { %v794_v58 = vpop.permute.xlu0 %793 }
 0x2f8   : > { %v1751_v43 = vpop.eup %1547 }
 0x2f9   : > { %1447 = vmatmul.mubr.msk.f32.vlgmr.msra.gmra.mrb[2].mxu1 %vm462_vm3, %v1751_v43  ;;  %v545_v29 = vsel %vm462_vm3, %v1751_v43, 0.0 }
 0x2fa   : > { %1450 = vmatpush3.xpose.msk.msra.mxu1 %vm462_vm3, %v629_v42  ;;  %1451 = vmatprep.mubr.msk.f32.mxu1 %vm1574_vm2, %v1575_v5 }
 0x2fb   : > { %1454 = vmatprep.subr.mxu1 %v1575_v5 }
 0x2fd   : > { %1452 = vmatmul.mubr.msk.f32.vlgmr.msra.gmra.mrb[4].mxu1 %vm462_vm3, %v627_v44 }
 0x2fe   : > { %1455 = vmatpush3.msra.mxu1 %v716_v45  ;;  %1456 = vmatprep.mubr.msk.f32.mxu1 %vm1574_vm2, %v1575_v5 }
 0x2ff   : > { %1459 = vmatprep.subr.mxu1 %v1575_v5 }
 0x3cc   : > { %v1763_v46 = vpop.f32.mrb[2].mxu1 }
 0x3cd   : > { %v1448_v47 = vpop.f32.mrb[3].mxu1 }
 0x3d0   : > { %v700_v48 = vpop.f32.mrb[4].mxu1 }
 0x3d1   : > { %v704_v49 = vmul.f32 0.35355338, %v700_v48  ;;  %v1453_v50 = vpop.f32.mrb[5].mxu1 }
 0x3d3   : > { %v705_v51 = vadd.f32 %v704_v49, %v1745_v33 }
 0x3d5   : > { %v706_v52 = vsel %vm462_vm3, %v705_v51, -inf }
 0x3d6   : > { %707 = vmax.xlane.f32.xlu1 %v706_v52 }
 0x3e7   : > { %795 = vrot.lane.b32.xlu1 %v1727_v24, %s1582_s26 }
 0x3eb   : > { %882 = vrot.lane.b32.xlu1 %v1727_v24, %s1583_s29 }
 0x3ef   : > { %962 = vrot.lane.b32.xlu1 %v1727_v24, %s1584_s30 }
 0x3f3   : > { %960 = vrot.lane.b32.xlu1 %v1727_v24, %s1585_s9 }
 0x463   : > { %v708_v53 = vpop.xlane.xlu1 %707 }
 0x464   : > { %v709_v54 = vsub.f32 %v705_v51, %v708_v53  ;;  %v1368_v53 = vld [vmem:[%s1848_s5] ss:$0 sm:$0xff] }
 0x466   : > { %v710_v55 = vmul.f32 1.442695, %v709_v54 }
 0x467   : > { %v796_v56 = vpop.permute.xlu1 %795 }
 0x468   : > { %1549 = vpow2.f32 %v710_v55 }
 0x46b   : > { %v883_v59 = vpop.permute.xlu1 %882 }
 0x46f   : > { %v963_v9 = vpop.permute.xlu1 %962 }
 0x472   : > { %v1550_v57 = vpop.eup %1549 }
 0x473   : > { %1457 = vmatmul.mubr.msk.f32.vlgmr.msra.gmra.mrb[6].mxu1 %vm462_vm3, %v1550_v57  ;;  %v961_v12 = vpop.permute.xlu1 %960  ;;  %v712_v22 = vsel %vm462_vm3, %v1550_v57, 0.0 }
 0x474   : > { %1460 = vmatpush3.xpose.msk.msra.mxu1 %vm462_vm3, %v796_v56  ;;  %1461 = vmatprep.mubr.msk.f32.mxu1 %vm1574_vm2, %v1575_v5 }
 0x475   : > { %1464 = vmatprep.subr.mxu1 %v1575_v5 }
 0x477   : > { %1462 = vmatmul.mubr.msk.f32.vlgmr.msra.gmra.mrb[8].mxu1 %vm462_vm3, %v794_v58 }
 0x478   : > { %1465 = vmatpush3.msra.mxu1 %v883_v59  ;;  %1466 = vmatprep.mubr.msk.f32.mxu1 %vm1574_vm2, %v1575_v5 }
 0x479   : > { %1469 = vmatprep.subr.mxu1 %v1575_v5 }
 0x546   : > { %v787_v60 = vpop.f32.mrb[6].mxu1 }
 0x547   : > { %v1458_v61 = vpop.f32.mrb[7].mxu1 }
 0x54a   : > { %v867_v62 = vpop.f32.mrb[8].mxu1 }
 0x54b   : > { %v871_v63 = vmul.f32 0.35355338, %v867_v62  ;;  %v1463_v0 = vpop.f32.mrb[9].mxu1 }
 0x54d   : > { %v872_v1 = vadd.f32 %v871_v63, %v1745_v33 }
 0x54f   : > { %v873_v3 = vsel %vm462_vm3, %v872_v1, -inf }
 0x550   : > { %874 = vmax.xlane.f32.xlu0 %v873_v3 }
 0x566   : > { %1049 = vrot.lane.b32.xlu0 %v1727_v24, %s1586_s10 }
 0x5dd   : > { %v875_v6 = vpop.xlane.xlu0 %874 }
 0x5de   : > { %v876_v7 = vsub.f32 %v872_v1, %v875_v6 }
 0x5e0   : > { %v877_v8 = vmul.f32 1.442695, %v876_v7  ;;  %v1375_v7 = vld [vmem:[%s1850_s7] ss:$0 sm:$0xff] }
 0x5e1   : > { %v1050_v13 = vpop.permute.xlu0 %1049 }
 0x5e2   : > { %1551 = vpow2.f32 %v877_v8 }
 0x5ec   : > { %v1552_v10 = vpop.eup %1551 }
 0x5ed   : > { %1467 = vmatmul.mubr.msk.f32.vlgmr.msra.gmra.mrb[10].mxu1 %vm462_vm3, %v1552_v10  ;;  %v879_v11 = vsel %vm462_vm3, %v1552_v10, 0.0 }
 0x5ee   : > { %1470 = vmatpush3.xpose.msk.msra.mxu1 %vm462_vm3, %v963_v9  ;;  %880 = vadd.xlane.f32.xlu0 %v879_v11 }
 0x5ef   : > { %1471 = vmatprep.mubr.msk.f32.mxu1 %vm1574_vm2, %v1575_v5  ;;  %1474 = vmatprep.subr.mxu1 %v1575_v5 }
 0x5f1   : > { %1472 = vmatmul.mubr.msk.f32.vlgmr.msra.gmra.mrb[12].mxu1 %vm462_vm3, %v961_v12 }
 0x5f2   : > { %1475 = vmatpush3.msra.mxu1 %v1050_v13  ;;  %1476 = vmatprep.mubr.msk.f32.mxu1 %vm1574_vm2, %v1575_v5 }
 0x5f3   : > { %1514 = vmatprep.subr.bf16.mxu1 %v1573_v2 }
 0x67b   : > { %v881_v30 = vpop.xlane.xlu0 %880 }
 0x6c0   : > { %v954_v14 = vpop.f32.mrb[10].mxu1 }
 0x6c1   : > { %v1468_v15 = vpop.f32.mrb[11].mxu1 }
 0x6c4   : > { %v1034_v16 = vpop.f32.mrb[12].mxu1 }
 0x6c5   : > { %v1038_v17 = vmul.f32 0.35355338, %v1034_v16  ;;  %v1473_v18 = vpop.f32.mrb[13].mxu1 }
 0x6c7   : > { %v1039_v19 = vadd.f32 %v1038_v17, %v1745_v33 }
 0x6c9   : > { %v1040_v20 = vsel %vm462_vm3, %v1039_v19, -inf }
 0x6ca   : > { %1041 = vmax.xlane.f32.xlu1 %v1040_v20 }
 0x6ce   : > { %713 = vadd.xlane.f32.xlu1 %v712_v22 }
 0x757   : > { %v1042_v23 = vpop.xlane.xlu1 %1041 }
 0x758   : > { %v1043_v24 = vsub.f32 %v1039_v19, %v1042_v23 }
 0x75a   : > { %v1044_v25 = vmul.f32 1.442695, %v1043_v24 }
 0x75b   : > { %v714_v28 = vpop.xlane.xlu1 %713 }
 0x75c   : > { %1553 = vpow2.f32 %v1044_v25 }
 0x75d   : > { %1555 = vrcp.f32 %v714_v28 }
 0x75e   : > { %1557 = vrcp.f32 %v881_v30 }
 0x766   : > { %v1554_v26 = vpop.eup %1553 }
 0x767   : > { %1477 = vmatmul.mubr.msk.f32.vlgmr.msra.gmra.mrb[14].mxu1 %vm462_vm3, %v1554_v26  ;;  %v1046_v27 = vsel %vm462_vm3, %v1554_v26, 0.0  ;;  %v1556_v31 = vpop.eup %1555 }
 0x768   : > { %1047 = vadd.xlane.f32.xlu1 %v1046_v27  ;;  %1487 = vmatprep.mubr.msk.f32.mxu1 %vm1574_vm2, %v1575_v5  ;;  %v792_v32 = vmul.f32 %v1556_v31, %v787_v60  ;;  %v1558_v33 = vpop.eup %1557  ;;  %v1144_v5 = vld [vmem:[%s1847_s4] sm:$0xff] }
 0x769   : > { %v959_v34 = vmul.f32 %v1558_v33, %v954_v14  ;;  %v1515_v36 = vpack.c.bf16 %v1145_v35, %v1144_v5 }
 0x76b   : > { %1517 = vmatpush3.bf16.xpose.msk.msra.mxu1 %vm1652_vm1, %v1515_v36 }
 0x76c   : > { %546 = vadd.xlane.f32.xlu1 %v545_v29  ;;  %1518 = vmatprep.subr.bf16.mxu1 %v1573_v2 }
 0x773   : > { %1521 = vmatpush3.bf16.xpose.msk.msra.mxu1 %vm1652_vm1, %v1519_v39 }
 0x77d   : > { %1128 = vrot.lane.b32.xlu1 %v792_v32, %s1587_s12  ;;  %s314_s12 = scalar_lea.vmem %s1851_s8, %s1339_s11 }
 0x781   : > { %1132 = vrot.lane.b32.xlu1 %v959_v34, %s1588_s13 }
 0x7f5   : > { %v1048_v40 = vpop.xlane.xlu1 %1047 }
 0x7f6   : > { %1559 = vrcp.f32 %v1048_v40 }
 0x7f9   : > { %v547_v2 = vpop.xlane.xlu1 %546 }
 0x7fa   : > { %1561 = vrcp.f32 %v547_v2 }
 0x7fd   : > { %v1129_v48 = vpop.permute.xlu1 %1128 }
 0x800   : > { %v1560_v41 = vpop.eup %1559 }
 0x801   : > { %v1133_v4 = vpop.permute.xlu1 %1132 }
 0x804   : > { %v1562_v45 = vpop.eup %1561 }
 0x805   : > { %v625_v47 = vmul.f32 %v1562_v45, %v1763_v46 }
 0x807   : > { %v1139_v49 = vsel %vm462_vm3, %v625_v47, %v1129_v48 }
 0x808   : > { %v1141_v50 = vsel %vm1140_vm5, %v1139_v49, %v1133_v4 }
 0x83a   : > { %v1121_v42 = vpop.f32.mrb[14].mxu1 }
 0x83b   : > { %v1126_v43 = vmul.f32 %v1560_v41, %v1121_v42  ;;  %v1478_v44 = vpop.f32.mrb[15].mxu1 }
 0x83d   : > { %1136 = vrot.lane.b32.xlu0 %v1126_v43, %s1589_s22 }
 0x8af   : > { %v1137_v51 = vpop.permute.xlu0 %1136 }
 0x8b0   : > { %v1143_v52 = vsel %vm1142_vm6, %v1141_v50, %v1137_v51 }
 0x8b1   : > { %1488 = vmatmul.mubr.msk.f32.vlgmr.msra.gmra.mrb[16].mxu1 %vm335_vm0, %v1143_v52 }
 0x984   : > { %v1236_v54 = vpop.f32.mrb[16].mxu1 }
 0x985   : > { %v1237_v55 = vadd.f32 %v1368_v53, %v1236_v54  ;;  %v1489_v56 = vpop.f32.mrb[17].mxu1 }
 0x987   : > { %v1242_v46 = vadd.f32 %v1237_v55, %v1720_v21  ;;  %v1374_v21 = vld [vmem:[%s1849_s6] ss:$0 sm:$0xff] }
 0x989   : > { %v1243_v57 = vsel %vm335_vm0, %v1242_v46, 0.0 }
 0x98a   : > { %1244 = vadd.xlane.f32.xlu1 %v1243_v57 }
 0xa17   : > { %v1245_v58 = vpop.xlane.xlu1 %1244 }
 0xa18   : > { %v1247_v59 = vmul.f32 0.03125, %v1245_v58 }
 0xa1a   : > { %v1248_v60 = vsub.f32 %v1242_v46, %v1247_v59 }
 0xa1c   : > { %v1249_v61 = vmul.f32 %v1248_v60, %v1248_v60 }
 0xa1e   : > { %v1250_v62 = vsel %vm335_vm0, %v1249_v61, 0.0 }
 0xa1f   : > { %1251 = vadd.xlane.f32.xlu0 %v1250_v62 }
 0xaac   : > { %v1252_v63 = vpop.xlane.xlu0 %1251 }
 0xaad   : > { %v1253_v0 = vmul.f32 0.03125, %v1252_v63 }
 0xaaf   : > { %v1254_v1 = vadd.f32 1e-05, %v1253_v0 }
 0xab1   : > { %1563 = vrsqrt.f32 %v1254_v1 }
 0xabb   : > { %v1564_v3 = vpop.eup %1563 }
 0xabc   : > { %v1256_v6 = vmul.f32 %v1564_v3, %v1248_v60 }
 0xabe   : > { %v1263_v8 = vmul.f32 %v1374_v21, %v1256_v6 }
 0xac0   : > { %v1270_v9 = vadd.f32 %v1375_v7, %v1263_v8 }
 0xac2   : > { %1271 = vst.msk [vmem:[%s314_s12] sm:$0xff] %vm335_vm0, %v1270_v9 }
 0xac3 PF: > { %s18_s27 = sadd.s32 1, %s1571_s27  }
 0xac4   : > { %p15_p4 = scmp.ge.s32.totalorder %s18_s27, 4  }
 0xac6   :  { %17 = sbr.rel (!%p15_p4) target bundleno = 1 (0x1), region = 85 }

// kernel: transformer_forward.16
= control target key start
LH: loop header
LB: loop body
LE: loop exit
PB: predicated region body
PF: predicated region fallthrough
CT: control target
= control target key end

     0   :  { %s1763_s30 = smov 0   ;;  %s1965_s0 = inlined_call_operand.vmem [shape: f32[2,8,32], index: 0, kind: input, shape index: {}]   ;;  %s1966_s1 = inlined_call_operand.vmem [shape: f32[2,8,32], index: 1, kind: input, shape index: {}]   ;;  %s1967_s2 = inlined_call_operand.vmem [shape: f32[2,1,8], index: 2, kind: input, shape index: {}]   ;;  %s1968_s3 = inlined_call_operand.vmem [shape: f32[96,32], index: 3, kind: input, shape index: {}]   ;;  %s1969_s4 = inlined_call_operand.vmem [shape: f32[1,96], index: 4, kind: input, shape index: {}]   ;;  %s1970_s5 = inlined_call_operand.vmem [shape: f32[32,32], index: 5, kind: input, shape index: {}]   ;;  %s1971_s6 = inlined_call_operand.vmem [shape: f32[1,32], index: 6, kind: input, shape index: {}]   ;;  %s1972_s7 = inlined_call_operand.vmem [shape: f32[1,32], index: 7, kind: input, shape index: {}]   ;;  %s1973_s8 = inlined_call_operand.vmem [shape: f32[1,32], index: 8, kind: input, shape index: {}]   ;;  %s1974_s9 = inlined_call_operand.vmem [shape: f32[2,8,32], index: 9, kind: output, shape index: {}]  }
   0x1 LB: > { %s1459_s10 = sadd.s32 4294967295, %s1698_s30   ;;  %p1463_p0 = scmp.ge.s32.totalorder %s1698_s30, 1  ;;  %s1698_s30 = sphi %s1763_s30, %s19_s30  }
   0x2   : > { %p303_p1 = scmp.lt.s32.totalorder %s1698_s30, 3 }
   0x4   : > { %p304_p2 = pnand %p1463_p0, %p303_p1 }
   0x5   : > { %v365_v0 = vld [vmem:[%s1968_s3 + $0x20] sm:$0xff] (!%p304_p2)  ;;  %v366_v1 = vld [vmem:[%s1968_s3 + $0x28] sm:$0xff] (!%p304_p2)  ;;  %vm380_vm0 = vcmask (!%p304_p2), 261120   ;;  %v1700_v2 = vmov (!%p304_p2), 0.0|0.0   ;;  %vm1701_vm2 = vmmov (!%p304_p2), 0   ;;  %v1702_v7 = vmov (!%p304_p2), 0.0  }
   0x6   : > { %307 = sbr.rel (%p304_p2) target bundleno = 1987 (0x7c3), region = 56  ;;  %1629 = vmatprep.subr.bf16.mxu1 (!%p304_p2), %v1700_v2  ;;  %vm1780_vm1 = vmpackc.low (!%p304_p2), %vm380_vm0, %vm380_vm0  ;;  %v1630_v4 = vpack.c.bf16 (!%p304_p2), %v366_v1, %v365_v0  ;;  %1621 = vmatprep.subr.bf16.mxu0 (!%p304_p2), %v1700_v2  ;;  %v361_v5 = vld [vmem:[%s1968_s3] sm:$0xff] (!%p304_p2)  ;;  %v362_v6 = vld [vmem:[%s1968_s3 + $0x8] sm:$0xff] (!%p304_p2)  ;;  %p344_p3 = scmp.lt.s32.totalorder (!%p304_p2), %s1459_s10, 1  ;;  %vm567_vm3 = vcmask (!%p304_p2), 64512   ;;  %vm1253_vm4 = vcmask (!%p304_p2), 130048  }
   0x7   : > { %1567 = vmatprep.mubr.msk.f32.mxu1 (!%p304_p2), %vm1701_vm2, %v1702_v7  ;;  %1548 = vmatprep.mubr.msk.f32.mxu0 (!%p304_p2), %vm1701_vm2, %v1702_v7  ;;  %v1622_v8 = vpack.c.bf16 (!%p304_p2), %v362_v6, %v361_v5  ;;  %v367_v9 = vld [vmem:[%s1968_s3 + $0x30] sm:$0xff] (!%p304_p2)  ;;  %v368_v10 = vld [vmem:[%s1968_s3 + $0x38] sm:$0xff] (!%p304_p2)  ;;  %v1467_v11 = vld [vmem:[%s1969_s4] ss:$0 sm:$0xff] (!%p304_p2)  ;;  %s1703_s25 = smov (!%p304_p2), 96   ;;  %s1704_s27 = smov (!%p304_p2), 120  }
   0x8   : > { %1632 = vmatpush3.bf16.xpose.msk.msra.mxu1 (!%p304_p2), %vm1780_vm1, %v1630_v4  ;;  %466 = vrot.lane.b32.xlu0 (!%p304_p2), %v1467_v11, %s1703_s25  ;;  %v363_v12 = vld [vmem:[%s1968_s3 + $0x10] sm:$0xff] (!%p304_p2)  ;;  %v364_v13 = vld [vmem:[%s1968_s3 + $0x18] sm:$0xff] (!%p304_p2)  ;;  %v1634_v14 = vpack.c.bf16 (!%p304_p2), %v368_v10, %v367_v9  ;;  %v369_v16 = vld [vmem:[%s1968_s3 + $0x40] sm:$0xff] (!%p304_p2)  ;;  %s1705_s28 = smov (!%p304_p2), 88   ;;  %s1706_s29 = smov (!%p304_p2), 112   ;;  %vm1255_vm5 = vcmask (!%p304_p2), 195584  }
   0x9   : > { %1633 = vmatprep.subr.bf16.mxu1 (!%p304_p2), %v1700_v2  ;;  %1624 = vmatpush3.bf16.xpose.msk.msra.mxu0 (!%p304_p2), %vm1780_vm1, %v1622_v8  ;;  %v1626_v15 = vpack.c.bf16 (!%p304_p2), %v364_v13, %v363_v12  ;;  %v370_v17 = vld [vmem:[%s1968_s3 + $0x48] sm:$0xff] (!%p304_p2)  ;;  %v371_v20 = vld [vmem:[%s1968_s3 + $0x50] sm:$0xff] (!%p304_p2)  ;;  %v372_v21 = vld [vmem:[%s1968_s3 + $0x58] sm:$0xff] (!%p304_p2)  ;;  %s1707_s11 = smov (!%p304_p2), 104   ;;  %s1708_s16 = smov (!%p304_p2), 80  }
   0xa   : > { %1625 = vmatprep.subr.bf16.mxu0 (!%p304_p2), %v1700_v2  ;;  %v1638_v18 = vpack.c.bf16 (!%p304_p2), %v370_v17, %v369_v16  ;;  %v1642_v22 = vpack.c.bf16 (!%p304_p2), %v372_v21, %v371_v20 }
   0xd   : > { %s1978_s10 = smov (!%p344_p3, %s1459_s10), 1 }
   0xe   : > { %s1835_s15 = sshll.u32 %s1978_s10, 3  ;;  %s354_s14 = scalar_lea.vmem %s1967_s2, %s1978_s10 }
   0xf   : > { %s347_s18 = scalar_lea.vmem %s1965_s0, %s1835_s15  ;;  %s351_s26 = scalar_lea.vmem %s1966_s1, %s1835_s15  ;;  %v1484_v35 = vld [vmem:[%s354_s14] ss:$0 sm:$0xff] }
  0x10   : > { %1636 = vmatpush3.bf16.xpose.msk.msra.mxu1 %vm1780_vm1, %v1634_v14  ;;  %v1842_v19 = vld [vmem:[%s347_s18] sm:$0xff]  ;;  %s1709_s10 = smov 72  }
  0x11   : > { %1637 = vmatprep.subr.bf16.mxu1 %v1700_v2  ;;  %1628 = vmatpush3.bf16.xpose.msk.msra.mxu0 %vm1780_vm1, %v1626_v15  ;;  %v360_v23 = vld [vmem:[%s351_s26] sm:$0xff]  ;;  %s1711_s26 = smov 16  }
  0x12   : > { %1580 = vmatprep.subr.mxu0 %v1702_v7 }
  0x18   : > { %1640 = vmatpush3.bf16.xpose.msk.msra.mxu1 %vm1780_vm1, %v1638_v18  ;;  %1549 = vmatmul.mubr.msk.f32.vlgmr.msra.gmra.mrb[0].mxu0 %vm380_vm0, %v1842_v19 }
  0x19   : > { %1641 = vmatprep.subr.bf16.mxu1 %v1700_v2  ;;  %1582 = vmatprep.mubr.msk.f32.mxu0 %vm1701_vm2, %v1702_v7 }
  0x20   : > { %1644 = vmatpush3.bf16.xpose.msk.msra.mxu1 %vm1780_vm1, %v1642_v22 }
  0x21   : > { %1570 = vmatprep.subr.mxu1 %v1702_v7 }
  0x27   : > { %1568 = vmatmul.mubr.msk.f32.vlgmr.msra.gmra.mrb[0].mxu1 %vm380_vm0, %v360_v23 }
  0x28   : > { %1572 = vmatprep.mubr.msk.f32.mxu1 %vm1701_vm2, %v1702_v7 }
  0x7a   : > { %v467_v27 = vpop.permute.xlu0 %466 }
  0xeb   : > { %v462_v24 = vpop.f32.mrb[0].mxu0 }
  0xec   : > { %v463_v25 = vadd.f32 %v1467_v11, %v462_v24  ;;  %v1550_v26 = vpop.f32.mrb[1].mxu0 }
  0xee   : > { %739 = vrot.lane.b32.xlu1 %v463_v25, %s1704_s27 }
  0xfa   : > { %v562_v28 = vpop.f32.mrb[0].mxu1 }
  0xfb   : > { %v1867_v29 = vadd.f32 %v562_v28, %v467_v27  ;;  %v1569_v30 = vpop.f32.mrb[1].mxu1 }
  0xfd   : > { %741 = vrot.lane.b32.xlu0 %v1867_v29, %s1704_s27  ;;  %1571 = vmatpush3.xpose.msk.msra.mxu1 %vm567_vm3, %v1867_v29  ;;  %s1712_s27 = smov 24  }
  0xfe   : > { %1575 = vmatprep.subr.mxu1 %v1702_v7 }
 0x100   : > { %1573 = vmatmul.mubr.msk.f32.vlgmr.msra.gmra.mrb[2].mxu1 %vm567_vm3, %v463_v25 }
 0x101   : > { %828 = vrot.lane.b32.xlu0 %v1867_v29, %s1705_s28  ;;  %1577 = vmatprep.mubr.msk.f32.mxu1 %vm1701_vm2, %v1702_v7 }
 0x105   : > { %908 = vrot.lane.b32.xlu0 %v1867_v29, %s1706_s29 }
 0x109   : > { %906 = vrot.lane.b32.xlu0 %v463_v25, %s1706_s29 }
 0x10d   : > { %1075 = vrot.lane.b32.xlu0 %v1867_v29, %s1707_s11 }
 0x111   : > { %1073 = vrot.lane.b32.xlu0 %v463_v25, %s1707_s11 }
 0x160   : > { %v740_v32 = vpop.permute.xlu1 %739 }
 0x16f   : > { %v742_v31 = vpop.permute.xlu0 %741 }
 0x170   : > { %1581 = vmatpush3.xpose.msk.msra.mxu0 %vm567_vm3, %v742_v31  ;;  %v1259_v31 = vld [vmem:[%s1970_s5 + $0x10] sm:$0xff] }
 0x171   : > { %1585 = vmatprep.subr.mxu0 %v1702_v7 }
 0x173   : > { %v829_v33 = vpop.permute.xlu0 %828  ;;  %1583 = vmatmul.mubr.msk.f32.vlgmr.msra.gmra.mrb[2].mxu0 %vm567_vm3, %v740_v32  ;;  %v1260_v32 = vld [vmem:[%s1970_s5 + $0x18] sm:$0xff] }
 0x174   : > { %1586 = vmatpush3.msra.mxu0 %v829_v33  ;;  %1587 = vmatprep.mubr.msk.f32.mxu0 %vm1701_vm2, %v1702_v7  ;;  %v1650_v33 = vpack.c.bf16 %v1260_v32, %v1259_v31 }
 0x175   : > { %1590 = vmatprep.subr.mxu0 %v1702_v7 }
 0x177   : > { %v909_v45 = vpop.permute.xlu0 %908 }
 0x17b   : > { %v907_v46 = vpop.permute.xlu0 %906 }
 0x17f   : > { %v1076_v47 = vpop.permute.xlu0 %1075 }
 0x183   : > { %v1074_v48 = vpop.permute.xlu0 %1073 }
 0x1d3   : > { %v640_v34 = vpop.f32.mrb[2].mxu1 }
 0x1d4   : > { %v644_v36 = vmul.f32 0.35355338, %v640_v34  ;;  %v1574_v37 = vpop.f32.mrb[3].mxu1 }
 0x1d6   : > { %v651_v38 = vadd.f32 %v1484_v35, %v644_v36 }
 0x1d8   : > { %v652_v39 = vsel %vm567_vm3, %v651_v38, -inf }
 0x1d9   : > { %653 = vmax.xlane.f32.xlu0 %v652_v39 }
 0x1ef   : > { %995 = vrot.lane.b32.xlu0 %v1867_v29, %s1708_s16 }
 0x246   : > { %v813_v40 = vpop.f32.mrb[2].mxu0 }
 0x247   : > { %v817_v41 = vmul.f32 0.35355338, %v813_v40  ;;  %v1584_v42 = vpop.f32.mrb[3].mxu0 }
 0x249   : > { %v818_v43 = vadd.f32 %v1484_v35, %v817_v41 }
 0x24b   : > { %v819_v44 = vsel %vm567_vm3, %v818_v43, -inf }
 0x24c   : > { %820 = vmax.xlane.f32.xlu1 %v819_v44 }
 0x25d   : > { %661 = vrot.lane.b32.xlu1 %v1867_v29, %s1703_s25  ;;  %s1710_s25 = smov 8  }
 0x266   : > { %v654_v49 = vpop.xlane.xlu0 %653 }
 0x267   : > { %v655_v50 = vsub.f32 %v651_v38, %v654_v49 }
 0x269   : > { %v656_v51 = vmul.f32 1.442695, %v655_v50 }
 0x26a   : > { %v996_v57 = vpop.permute.xlu0 %995 }
 0x26b   : > { %1674 = vpow2.f32 %v656_v51  ;;  %v1495_v51 = vld [vmem:[%s1971_s6] ss:$0 sm:$0xff] }
 0x275   : > { %v1675_v56 = vpop.eup %1674 }
 0x276   : > { %v658_v25 = vsel %vm567_vm3, %v1675_v56, 0.0 }
 0x2d9   : > { %v821_v52 = vpop.xlane.xlu1 %820 }
 0x2da   : > { %v822_v53 = vsub.f32 %v818_v43, %v821_v52 }
 0x2dc   : > { %v823_v54 = vmul.f32 1.442695, %v822_v53 }
 0x2dd   : > { %v662_v55 = vpop.permute.xlu1 %661 }
 0x2de   : > { %1676 = vpow2.f32 %v823_v54  ;;  %1576 = vmatpush3.msra.mxu1 %v662_v55 }
 0x2df   : > { %1578 = vmatmul.mubr.msk.f32.vlgmr.msra.gmra.mrb[4].mxu1 %vm567_vm3, %v1675_v56  ;;  %1595 = vmatprep.subr.mxu1 %v1702_v7 }
 0x2e0   : > { %1596 = vmatpush3.msra.mxu1 %v996_v57  ;;  %1597 = vmatprep.mubr.msk.f32.mxu1 %vm1701_vm2, %v1702_v7 }
 0x2e1   : > { %1605 = vmatprep.subr.mxu1 %v1702_v7 }
 0x2e8   : > { %v1677_v58 = vpop.eup %1676 }
 0x2e9   : > { %1588 = vmatmul.mubr.msk.f32.vlgmr.msra.gmra.mrb[4].mxu0 %vm567_vm3, %v1677_v58  ;;  %v825_v12 = vsel %vm567_vm3, %v1677_v58, 0.0 }
 0x2ea   : > { %1591 = vmatpush3.xpose.msk.msra.mxu0 %vm567_vm3, %v909_v45  ;;  %1592 = vmatprep.mubr.msk.f32.mxu0 %vm1701_vm2, %v1702_v7 }
 0x2eb   : > { %1600 = vmatprep.subr.mxu0 %v1702_v7 }
 0x2ed   : > { %1593 = vmatmul.mubr.msk.f32.vlgmr.msra.gmra.mrb[6].mxu0 %vm567_vm3, %v907_v46 }
 0x2ee   : > { %1601 = vmatpush3.xpose.msk.msra.mxu0 %vm567_vm3, %v1076_v47  ;;  %1602 = vmatprep.mubr.msk.f32.mxu0 %vm1701_vm2, %v1702_v7 }
 0x2ef   : > { %1645 = vmatprep.subr.bf16.mxu0 %v1700_v2 }
 0x2f1   : > { %1603 = vmatmul.mubr.msk.f32.vlgmr.msra.gmra.mrb[8].mxu0 %vm567_vm3, %v1074_v48 }
 0x2f2   : > { %1618 = vmatprep.mubr.msk.f32.mxu0 %vm1701_vm2, %v1702_v7 }
 0x3b2   : > { %v1912_v59 = vpop.f32.mrb[4].mxu1 }
 0x3b3   : > { %v1579_v60 = vpop.f32.mrb[5].mxu1 }
 0x3bc   : > { %v900_v61 = vpop.f32.mrb[4].mxu0 }
 0x3bd   : > { %v1589_v62 = vpop.f32.mrb[5].mxu0 }
 0x3c0   : > { %v980_v63 = vpop.f32.mrb[6].mxu0 }
 0x3c1   : > { %v984_v0 = vmul.f32 0.35355338, %v980_v63  ;;  %v1594_v1 = vpop.f32.mrb[7].mxu0 }
 0x3c3   : > { %v985_v4 = vadd.f32 %v1484_v35, %v984_v0 }
 0x3c4   : > { %v1147_v5 = vpop.f32.mrb[8].mxu0 }
 0x3c5   : > { %v1151_v6 = vmul.f32 0.35355338, %v1147_v5  ;;  %v1604_v8 = vpop.f32.mrb[9].mxu0  ;;  %v986_v9 = vsel %vm567_vm3, %v985_v4, -inf  ;;  %v1502_v5 = vld [vmem:[%s1973_s8] ss:$0 sm:$0xff] }
 0x3c6   : > { %987 = vmax.xlane.f32.xlu1 %v986_v9 }
 0x3c7   : > { %v1152_v10 = vadd.f32 %v1484_v35, %v1151_v6 }
 0x3c9   : > { %v1153_v11 = vsel %vm567_vm3, %v1152_v10, -inf }
 0x3ca   : > { %1154 = vmax.xlane.f32.xlu1 %v1153_v11 }
 0x3db   : > { %1162 = vrot.lane.b32.xlu1 %v1867_v29, %s1709_s10  ;;  %v1257_v29 = vld [vmem:[%s1970_s5] sm:$0xff] }
 0x3ff   : > { %826 = vadd.xlane.f32.xlu1 %v825_v12 }
 0x453   : > { %v988_v13 = vpop.xlane.xlu1 %987 }
 0x454   : > { %v989_v14 = vsub.f32 %v985_v4, %v988_v13 }
 0x456   : > { %v990_v15 = vmul.f32 1.442695, %v989_v14 }
 0x457   : > { %v1155_v16 = vpop.xlane.xlu1 %1154 }
 0x458   : > { %1678 = vpow2.f32 %v990_v15  ;;  %v1156_v17 = vsub.f32 %v1152_v10, %v1155_v16 }
 0x45a   : > { %v1157_v18 = vmul.f32 1.442695, %v1156_v17 }
 0x45b   : > { %v1163_v21 = vpop.permute.xlu1 %1162 }
 0x45c   : > { %1680 = vpow2.f32 %v1157_v18 }
 0x462   : > { %v1679_v20 = vpop.eup %1678 }
 0x463   : > { %1598 = vmatmul.mubr.msk.f32.vlgmr.msra.gmra.mrb[6].mxu1 %vm567_vm3, %v1679_v20  ;;  %v992_v22 = vsel %vm567_vm3, %v1679_v20, 0.0 }
 0x464   : > { %1606 = vmatpush3.msra.mxu1 %v1163_v21  ;;  %993 = vadd.xlane.f32.xlu0 %v992_v22 }
 0x465   : > { %1607 = vmatprep.mubr.msk.f32.mxu1 %vm1701_vm2, %v1702_v7  ;;  %v1258_v7 = vld [vmem:[%s1970_s5 + $0x8] sm:$0xff] }
 0x466   : > { %v1681_v23 = vpop.eup %1680  ;;  %v1646_v30 = vpack.c.bf16 %v1258_v7, %v1257_v29 }
 0x467   : > { %1608 = vmatmul.mubr.msk.f32.vlgmr.msra.gmra.mrb[8].mxu1 %vm567_vm3, %v1681_v23  ;;  %v1159_v24 = vsel %vm567_vm3, %v1681_v23, 0.0 }
 0x468   : > { %1160 = vadd.xlane.f32.xlu1 %v1159_v24  ;;  %1648 = vmatpush3.bf16.xpose.msk.msra.mxu0 %vm1780_vm1, %v1646_v30 }
 0x469   : > { %1649 = vmatprep.subr.bf16.mxu0 %v1700_v2 }
 0x46c   : > { %659 = vadd.xlane.f32.xlu1 %v658_v25 }
 0x470   : > { %1652 = vmatpush3.bf16.xpose.msk.msra.mxu0 %vm1780_vm1, %v1650_v33 }
 0x48c   : > { %v827_v26 = vpop.xlane.xlu1 %826 }
 0x48d   : > { %1682 = vrcp.f32 %v827_v26 }
 0x497   : > { %v1683_v27 = vpop.eup %1682 }
 0x498   : > { %v905_v28 = vmul.f32 %v1683_v27, %v900_v61 }
 0x49a   : > { %1241 = vrot.lane.b32.xlu0 %v905_v28, %s1710_s25  ;;  %s358_s25 = scalar_lea.vmem %s1974_s9, %s1835_s15 }
 0x4f1   : > { %v994_v34 = vpop.xlane.xlu0 %993 }
 0x4f2   : > { %1684 = vrcp.f32 %v994_v34 }
 0x4f5   : > { %v1161_v35 = vpop.xlane.xlu1 %1160 }
 0x4f6   : > { %1686 = vrcp.f32 %v1161_v35 }
 0x4f9   : > { %v660_v43 = vpop.xlane.xlu1 %659 }
 0x4fa   : > { %1688 = vrcp.f32 %v660_v43 }
 0x4fc   : > { %v1685_v36 = vpop.eup %1684 }
 0x500   : > { %v1687_v39 = vpop.eup %1686 }
 0x504   : > { %v1689_v3 = vpop.eup %1688 }
 0x505   : > { %v738_v46 = vmul.f32 %v1689_v3, %v1912_v59 }
 0x50c   : > { %v1242_v44 = vpop.permute.xlu0 %1241 }
 0x50d   : > { %v1252_v47 = vsel %vm567_vm3, %v738_v46, %v1242_v44 }
 0x536   : > { %v1067_v37 = vpop.f32.mrb[6].mxu1 }
 0x537   : > { %v1072_v38 = vmul.f32 %v1685_v36, %v1067_v37  ;;  %v1599_v2 = vpop.f32.mrb[7].mxu1 }
 0x539   : > { %1245 = vrot.lane.b32.xlu1 %v1072_v38, %s1711_s26 }
 0x53a   : > { %v1234_v40 = vpop.f32.mrb[8].mxu1 }
 0x53b   : > { %v1239_v41 = vmul.f32 %v1687_v39, %v1234_v40  ;;  %v1609_v42 = vpop.f32.mrb[9].mxu1 }
 0x53d   : > { %1249 = vrot.lane.b32.xlu1 %v1239_v41, %s1712_s27 }
 0x5ab   : > { %v1246_v45 = vpop.permute.xlu1 %1245 }
 0x5ac   : > { %v1254_v48 = vsel %vm1253_vm4, %v1252_v47, %v1246_v45 }
 0x5af   : > { %v1250_v49 = vpop.permute.xlu1 %1249 }
 0x5b0   : > { %v1256_v50 = vsel %vm1255_vm5, %v1254_v48, %v1250_v49 }
 0x5b1   : > { %1619 = vmatmul.mubr.msk.f32.vlgmr.msra.gmra.mrb[10].mxu0 %vm380_vm0, %v1256_v50 }
 0x684   : > { %v1349_v52 = vpop.f32.mrb[10].mxu0 }
 0x685   : > { %v1350_v53 = vadd.f32 %v1495_v51, %v1349_v52  ;;  %v1620_v54 = vpop.f32.mrb[11].mxu0 }
 0x687   : > { %v1355_v55 = vadd.f32 %v1350_v53, %v1842_v19  ;;  %v1501_v19 = vld [vmem:[%s1972_s7] ss:$0 sm:$0xff] }
 0x689   : > { %v1356_v56 = vsel %vm380_vm0, %v1355_v55, 0.0 }
 0x68a   : > { %1357 = vadd.xlane.f32.xlu0 %v1356_v56 }
 0x717   : > { %v1358_v57 = vpop.xlane.xlu0 %1357 }
 0x718   : > { %v1360_v58 = vmul.f32 0.03125, %v1358_v57 }
 0x71a   : > { %v1361_v59 = vsub.f32 %v1355_v55, %v1360_v58 }
 0x71c   : > { %v1362_v60 = vmul.f32 %v1361_v59, %v1361_v59 }
 0x71e   : > { %v1363_v61 = vsel %vm380_vm0, %v1362_v60, 0.0 }
 0x71f   : > { %1364 = vadd.xlane.f32.xlu1 %v1363_v61 }
 0x7ac   : > { %v1365_v62 = vpop.xlane.xlu1 %1364 }
 0x7ad   : > { %v1366_v63 = vmul.f32 0.03125, %v1365_v62 }
 0x7af   : > { %v1367_v0 = vadd.f32 1e-05, %v1366_v63 }
 0x7b1   : > { %1690 = vrsqrt.f32 %v1367_v0 }
 0x7bb   : > { %v1691_v1 = vpop.eup %1690 }
 0x7bc   : > { %v1369_v4 = vmul.f32 %v1691_v1, %v1361_v59 }
 0x7be   : > { %v1376_v6 = vmul.f32 %v1501_v19, %v1369_v4 }
 0x7c0   : > { %v1383_v8 = vadd.f32 %v1502_v5, %v1376_v6 }
 0x7c2   : > { %1384 = vst.msk [vmem:[%s358_s25] sm:$0xff] %vm380_vm0, %v1383_v8 }
 0x7c3 PF: > { %s19_s30 = sadd.s32 1, %s1698_s30  }
 0x7c4   : > { %p16_p4 = scmp.ge.s32.totalorder %s19_s30, 4  }
 0x7c6   :  { %18 = sbr.rel (!%p16_p4) target bundleno = 1 (0x1), region = 92 }

// kernel: transformer_forward.21
= control target key start
LH: loop header
LB: loop body
LE: loop exit
PB: predicated region body
PF: predicated region fallthrough
CT: control target
= control target key end

     0   :  { %vm40_vm0 = vcmask 261120   ;;  %s437_s1 = inlined_call_operand.vmem [shape: f32[128,32], index: 1, kind: input, shape index: {}]   ;;  %s438_s0 = inlined_call_operand.vmem [shape: f32[16,32], index: 0, kind: input, shape index: {}]   ;;  %s439_s2 = inlined_call_operand.vmem [shape: f32[1,128], index: 2, kind: input, shape index: {}]   ;;  %s440_s3 = inlined_call_operand.vmem [shape: f32[16,128], index: 3, kind: output, shape index: {}]  }
   0x1   :  { %v24_v0 = vld [vmem:[%s437_s1] sm:$0xff]  ;;  %v25_v1 = vld [vmem:[%s437_s1 + $0x8] sm:$0xff]  ;;  %vm342_vm1 = vmpackc.low %vm40_vm0, %vm40_vm0 }
   0x2   :  { %v266_v3 = vpack.c.bf16 %v25_v1, %v24_v0  ;;  %v26_v4 = vld [vmem:[%s437_s1 + $0x10] sm:$0xff]  ;;  %v27_v5 = vld [vmem:[%s437_s1 + $0x18] sm:$0xff]  ;;  %v22_v7 = vld [vmem:[%s438_s0] sm:$0xff] }
   0x3   :  { %v272_v6 = vpack.c.bf16 %v27_v5, %v26_v4  ;;  %v28_v8 = vld [vmem:[%s437_s1 + $0x20] sm:$0xff]  ;;  %v29_v9 = vld [vmem:[%s437_s1 + $0x28] sm:$0xff]  ;;  %263 = vmatprep.mubr.msk.f32.mxu0 %vm40_vm0, %v22_v7  ;;  %v30_v11 = vld [vmem:[%s437_s1 + $0x30] sm:$0xff] }
   0x4   :  { %268 = vmatprep.subr.msk.bf16.mxu0 %vm342_vm1, %v266_v3  ;;  %v278_v10 = vpack.c.bf16 %v29_v9, %v28_v8  ;;  %v31_v12 = vld [vmem:[%s437_s1 + $0x38] sm:$0xff]  ;;  %v32_v14 = vld [vmem:[%s437_s1 + $0x40] sm:$0xff]  ;;  %v33_v15 = vld [vmem:[%s437_s1 + $0x48] sm:$0xff] }
   0x5   :  { %271 = vmatpush3.bf16.xpose.msk.msra.mxu0 %vm342_vm1, %v266_v3  ;;  %v284_v13 = vpack.c.bf16 %v31_v12, %v30_v11  ;;  %v290_v16 = vpack.c.bf16 %v33_v15, %v32_v14  ;;  %v34_v17 = vld [vmem:[%s437_s1 + $0x50] sm:$0xff]  ;;  %v35_v18 = vld [vmem:[%s437_s1 + $0x58] sm:$0xff]  ;;  %v36_v20 = vld [vmem:[%s437_s1 + $0x60] sm:$0xff] }
   0x6   :  { %274 = vmatprep.subr.msk.bf16.mxu0 %vm342_vm1, %v272_v6  ;;  %v296_v19 = vpack.c.bf16 %v35_v18, %v34_v17  ;;  %v37_v21 = vld [vmem:[%s437_s1 + $0x68] sm:$0xff]  ;;  %v38_v23 = vld [vmem:[%s437_s1 + $0x70] sm:$0xff]  ;;  %v39_v24 = vld [vmem:[%s437_s1 + $0x78] sm:$0xff] }
   0x7   :  { %v302_v22 = vpack.c.bf16 %v37_v21, %v36_v20  ;;  %v308_v25 = vpack.c.bf16 %v39_v24, %v38_v23  ;;  %v23_v26 = vld [vmem:[%s438_s0 + $0x8] sm:$0xff]  ;;  %v212_v27 = vld [vmem:[%s439_s2] ss:$0 sm:$0xff] }
   0xd   :  { %277 = vmatpush3.bf16.xpose.msk.msra.mxu0 %vm342_vm1, %v272_v6 }
   0xe   :  { %280 = vmatprep.subr.msk.bf16.mxu0 %vm342_vm1, %v278_v10 }
  0x15   :  { %283 = vmatpush3.bf16.xpose.msk.msra.mxu0 %vm342_vm1, %v278_v10 }
  0x16   :  { %286 = vmatprep.subr.msk.bf16.mxu0 %vm342_vm1, %v284_v13 }
  0x1d   :  { %289 = vmatpush3.bf16.xpose.msk.msra.mxu0 %vm342_vm1, %v284_v13 }
  0x1e   :  { %292 = vmatprep.subr.msk.bf16.mxu0 %vm342_vm1, %v290_v16 }
  0x25   :  { %295 = vmatpush3.bf16.xpose.msk.msra.mxu0 %vm342_vm1, %v290_v16 }
  0x26   :  { %298 = vmatprep.subr.msk.bf16.mxu0 %vm342_vm1, %v296_v19 }
  0x2d   :  { %301 = vmatpush3.bf16.xpose.msk.msra.mxu0 %vm342_vm1, %v296_v19 }
  0x2e   :  { %304 = vmatprep.subr.msk.bf16.mxu0 %vm342_vm1, %v302_v22 }
  0x35   :  { %307 = vmatpush3.bf16.xpose.msk.msra.mxu0 %vm342_vm1, %v302_v22 }
  0x36   :  { %310 = vmatprep.subr.msk.bf16.mxu0 %vm342_vm1, %v308_v25 }
  0x3d   :  { %313 = vmatpush3.bf16.xpose.msk.msra.mxu0 %vm342_vm1, %v308_v25 }
  0x44   :  { %264 = vmatmul.mubr.msk.f32.vlgmr.msra.gmra.mrb[0].mxu0 %vm40_vm0, %v23_v26 }
 0x117   :  { %v265_v28 = vpop.f32.mrb[0].mxu0 }
 0x118   :  { %v187_v29 = vadd.f32 %v265_v28, %v212_v27  ;;  %v161_v30 = vpop.f32.mrb[1].mxu0 }
 0x119   :  { %v186_v31 = vadd.f32 %v212_v27, %v161_v30 }
 0x11a   :  { %189 = vst [vmem:[%s440_s3 + $0x8] sm:$0xff] %v187_v29 }
 0x11b   :  { %188 = vst [vmem:[%s440_s3] sm:$0xff] %v186_v31 }

</bundles_post_ra>
